<compile_context>
chip_gen: v7x
topology: tpu7x:2x2x1
jax: 0.10.0
libtpu: 0.0.40
codegen_flags: <defaults>
</compile_context>

<pallas_src>
import math

import jax
import jax.numpy as jnp
from jax import lax
from jax.experimental import pallas as pl
from jax.experimental.pallas import tpu as pltpu

# ----------------------------- model config ---------------------------------
B = 2            # batch
S = 8            # sequence length
H = 32           # hidden size
NH = 4           # attention heads
HD = H // NH     # head dim
F = 64           # FFN intermediate size
NUM_LAYERS = 2
VOCAB = 128
MAX_POS = 16
TYPE_VOCAB = 2
LN_EPS = 1e-12


# ----------------------------- kernel helpers --------------------------------
def _layernorm(x, gamma, beta):
    mean = jnp.mean(x, axis=-1, keepdims=True)
    xc = x - mean
    var = jnp.mean(xc * xc, axis=-1, keepdims=True)
    return xc * lax.rsqrt(var + LN_EPS) * gamma + beta


def _gelu(x):
    # TODO(synk): HF BERT's default activation is the erf-based gelu; the tanh
    # approximation is used here (EUP-friendly, avoids an erf lowering).
    c = math.sqrt(2.0 / math.pi)
    return 0.5 * x * (1.0 + jnp.tanh(c * (x + 0.044715 * x * x * x)))


# ----------------------------- fused Pallas kernel ---------------------------
def bert_kernel(ids_ref, mask_ref,
                wemb_ref, pemb_ref, temb_ref, eg_ref, eb_ref,
                wqkv_ref, bqkv_ref, wo_ref, bo_ref, ln1g_ref, ln1b_ref,
                w1_ref, fb1_ref, w2_ref, fb2_ref, ln2g_ref, ln2b_ref,
                wp_ref, bp_ref,
                hid_ref, pool_ref):
    """One grid step == one batch element's full encoder forward + pooler."""
    f32 = jnp.float32
    bf16 = jnp.bfloat16

    # ---- embeddings: one-hot matmul "gather" (VOCAB=128 -> lane-dense) ------
    # TODO(synk): for a real vocab (~30k) replace with a scalar-prefetch /
    # per-row DMA gather; the one-hot matmul only makes sense at VOCAB<=128.
    ids = ids_ref[0]                                                    # (S, 1) int32
    onehot = (lax.broadcasted_iota(jnp.int32, (S, VOCAB), 1) == ids).astype(bf16)
    word = jnp.dot(onehot, wemb_ref[...], preferred_element_type=f32)   # (S, H)
    pos = pemb_ref[0:S, :].astype(f32)                                  # (S, H)
    typ = temb_ref[0:1, :].astype(f32)                                  # token_type_id = 0
    x = _layernorm(word + pos + typ, eg_ref[...], eb_ref[...])          # (S, H) f32

    # ---- key-padding additive mask for this batch only -----------------------
    mask_add = jnp.where(mask_ref[0] > 0.5, 0.0, -1e9).astype(f32)      # (1, S)
    mask_add = mask_add[None]                                           # (1, 1, S)

    scale = 1.0 / math.sqrt(HD)

    # ---- encoder layers (stacked weights; static loop at toy depth) ---------
    for li in range(NUM_LAYERS):
        xb = x.astype(bf16)                                             # single cast / layer

        # fused QKV: one full-K (S,H)@(H,3H) MXU matmul, lane-dense output
        qkv = jnp.dot(xb, wqkv_ref[li], preferred_element_type=f32) + bqkv_ref[li]
        qkv_b = qkv.astype(bf16)                                        # (S, 3H)

        # head split only where the contraction is intrinsically HD-deep
        q_h = qkv_b[:, 0:H].reshape(S, NH, HD).transpose(1, 0, 2)       # (NH, S, HD)
        k_h = qkv_b[:, H:2 * H].reshape(S, NH, HD).transpose(1, 0, 2)
        v_h = qkv_b[:, 2 * H:3 * H].reshape(S, NH, HD).transpose(1, 0, 2)

        s = jnp.einsum('hqd,hkd->hqk', q_h, k_h,
                       preferred_element_type=f32) * scale              # (NH, S, S)
        s = s + mask_add
        s_max = jnp.max(s, axis=-1, keepdims=True)
        p = jnp.exp(s - s_max)
        p = p * pl.reciprocal(jnp.sum(p, axis=-1, keepdims=True), approx=True)

        ctx = jnp.einsum('hqk,hkd->hqd', p.astype(bf16), v_h,
                         preferred_element_type=f32)                    # (NH, S, HD)
        ctx_packed = ctx.transpose(1, 0, 2).reshape(S, NH * HD)         # (S, H) lane-dense

        # fused output projection: one (S, NH*HD)@(NH*HD, H) matmul
        attn_out = jnp.dot(ctx_packed.astype(bf16), wo_ref[li],
                           preferred_element_type=f32) + bo_ref[li]     # (S, H)

        h1 = _layernorm(x + attn_out, ln1g_ref[li], ln1b_ref[li])

        ff = _gelu(jnp.dot(h1.astype(bf16), w1_ref[li],
                           preferred_element_type=f32) + fb1_ref[li])   # (S, F)
        ff_out = jnp.dot(ff.astype(bf16), w2_ref[li],
                         preferred_element_type=f32) + fb2_ref[li]      # (S, H)
        x = _layernorm(h1 + ff_out, ln2g_ref[li], ln2b_ref[li])

    hid_ref[0] = x.astype(hid_ref.dtype)                                # (S, H)

    # ---- pooler: tanh(CLS @ Wp + bp); CLS is simply row 0 of this batch -----
    cls = x[0:1, :]                                                     # (1, H)
    pooled = jnp.tanh(jnp.dot(cls.astype(bf16), wp_ref[...],
                              preferred_element_type=f32) + bp_ref[...])
    pool_ref[0] = pooled.astype(pool_ref.dtype)


# ----------------------------- wrapper ---------------------------------------
def _full_spec(shape):
    nd = len(shape)
    return pl.BlockSpec(shape, lambda b, _nd=nd: (0,) * _nd)


def forward(params, input_ids, attention_mask):
    # Mirrors HuggingFaceTextModel.forward after tokenization:
    # returns output.to_tuple() == (last_hidden_state, pooler_output).
    ids = input_ids.reshape(B, S, 1).astype(jnp.int32)
    mask = attention_mask.reshape(B, 1, S).astype(jnp.float32)

    weight_keys = [
        "word_emb", "pos_emb", "type_emb", "emb_ln_g", "emb_ln_b",
        "wqkv", "bqkv", "wo", "bo", "ln1_g", "ln1_b",
        "w1", "b1", "w2", "b2", "ln2_g", "ln2_b",
        "pooler_w", "pooler_b",
    ]
    weights = [params[k] for k in weight_keys]

    in_specs = [
        pl.BlockSpec((1, S, 1), lambda b: (b, 0, 0)),   # ids (per batch)
        pl.BlockSpec((1, 1, S), lambda b: (b, 0, 0)),   # attention mask (per batch)
    ] + [_full_spec(w.shape) for w in weights]          # weights: full, constant index

    out_specs = (
        pl.BlockSpec((1, S, H), lambda b: (b, 0, 0)),   # last_hidden_state
        pl.BlockSpec((1, 1, H), lambda b: (b, 0, 0)),   # pooler_output
    )

    last_hidden, pooled = pl.pallas_call(
        bert_kernel,
        out_shape=(jax.ShapeDtypeStruct((B, S, H), jnp.float32),
                   jax.ShapeDtypeStruct((B, 1, H), jnp.float32)),
        grid=(B,),
        in_specs=in_specs,
        out_specs=out_specs,
        compiler_params=pltpu.CompilerParams(
            dimension_semantics=("parallel",)),          # 2 TCs on v7x; no-op v5e/v6e
    )(ids, mask, *weights)

    return last_hidden, pooled.reshape(B, H)


# ----------------------------- parameter init --------------------------------
def init_params(key):
    def nrm(k, shape, scale=0.02, dtype=jnp.bfloat16):
        return (scale * jax.random.normal(k, shape, jnp.float32)).astype(dtype)

    keys = jax.random.split(key, 10)

    # Host-side layout plumbing: pre-concatenate Q/K/V columns so the kernel
    # does a single fused (H, 3H) projection matmul.
    wq = nrm(keys[0], (NUM_LAYERS, H, H))
    wk = nrm(keys[1], (NUM_LAYERS, H, H))
    wv = nrm(keys[2], (NUM_LAYERS, H, H))
    wqkv = jnp.concatenate([wq, wk, wv], axis=-1)        # (L, H, 3H)

    return {
        "word_emb": nrm(keys[3], (VOCAB, H)),
        "pos_emb": nrm(keys[4], (MAX_POS, H)),
        "type_emb": nrm(keys[5], (TYPE_VOCAB, H)),
        "emb_ln_g": jnp.ones((1, H), jnp.float32),
        "emb_ln_b": jnp.zeros((1, H), jnp.float32),
        "wqkv": wqkv,
        "bqkv": jnp.zeros((NUM_LAYERS, 1, 3 * H), jnp.float32),
        "wo": nrm(keys[6], (NUM_LAYERS, H, H)),
        "bo": jnp.zeros((NUM_LAYERS, 1, H), jnp.float32),
        "ln1_g": jnp.ones((NUM_LAYERS, 1, H), jnp.float32),
        "ln1_b": jnp.zeros((NUM_LAYERS, 1, H), jnp.float32),
        "w1": nrm(keys[7], (NUM_LAYERS, H, F)),
        "b1": jnp.zeros((NUM_LAYERS, 1, F), jnp.float32),
        "w2": nrm(keys[8], (NUM_LAYERS, F, H)),
        "b2": jnp.zeros((NUM_LAYERS, 1, H), jnp.float32),
        "ln2_g": jnp.ones((NUM_LAYERS, 1, H), jnp.float32),
        "ln2_b": jnp.zeros((NUM_LAYERS, 1, H), jnp.float32),
        "pooler_w": nrm(keys[9], (H, H)),
        "pooler_b": jnp.zeros((1, H), jnp.float32),
    }


if __name__ == "__main__":
    key = jax.random.PRNGKey(0)
    pkey, dkey = jax.random.split(key)
    params = init_params(pkey)

    # TODO(synk): the HF tokenizer (string -> token ids) has no Pallas
    # equivalent; deterministic token ids stand in for tokenizer output.
    input_ids = jax.random.randint(dkey, (B, S), 0, VOCAB, dtype=jnp.int32)
    attention_mask = jnp.ones((B, S), jnp.int32)

    last_hidden, pooled = jax.jit(forward)(params, input_ids, attention_mask)
    jax.block_until_ready((last_hidden, pooled))

    assert last_hidden.shape == (B, S, H) and last_hidden.dtype == jnp.float32
    assert pooled.shape == (B, H) and pooled.dtype == jnp.float32
    assert bool(jnp.all(jnp.isfinite(last_hidden))) and bool(jnp.all(jnp.isfinite(pooled)))
    print("KERNEL_OK")
</pallas_src>

<mosaic_0001>
module attributes {stable_mosaic.version = 11 : i64} {
  func.func @bert_kernel(%arg0: i32, %arg1: memref<1x8x1xi32, #tpu.memory_space<vmem>>, %arg2: memref<1x1x8xf32, #tpu.memory_space<vmem>>, %arg3: memref<128x32xbf16, #tpu.memory_space<vmem>>, %arg4: memref<16x32xbf16, #tpu.memory_space<vmem>>, %arg5: memref<2x32xbf16, #tpu.memory_space<vmem>>, %arg6: memref<1x32xf32, #tpu.memory_space<vmem>>, %arg7: memref<1x32xf32, #tpu.memory_space<vmem>>, %arg8: memref<2x32x96xbf16, #tpu.memory_space<vmem>>, %arg9: memref<2x1x96xf32, #tpu.memory_space<vmem>>, %arg10: memref<2x32x32xbf16, #tpu.memory_space<vmem>>, %arg11: memref<2x1x32xf32, #tpu.memory_space<vmem>>, %arg12: memref<2x1x32xf32, #tpu.memory_space<vmem>>, %arg13: memref<2x1x32xf32, #tpu.memory_space<vmem>>, %arg14: memref<2x32x64xbf16, #tpu.memory_space<vmem>>, %arg15: memref<2x1x64xf32, #tpu.memory_space<vmem>>, %arg16: memref<2x64x32xbf16, #tpu.memory_space<vmem>>, %arg17: memref<2x1x32xf32, #tpu.memory_space<vmem>>, %arg18: memref<2x1x32xf32, #tpu.memory_space<vmem>>, %arg19: memref<2x1x32xf32, #tpu.memory_space<vmem>>, %arg20: memref<32x32xbf16, #tpu.memory_space<vmem>>, %arg21: memref<1x32xf32, #tpu.memory_space<vmem>>, %arg22: memref<1x8x32xf32, #tpu.memory_space<vmem>>, %arg23: memref<1x1x32xf32, #tpu.memory_space<vmem>>) attributes {dimension_semantics = [#tpu.dimension_semantics<parallel>], iteration_bounds = array<i64: 2>, scalar_prefetch = 0 : i64, scratch_operands = 0 : i64, tpu.core_type = #tpu.core_type<tc>, window_params = [{transform_indices = @transform_0, window_bounds = array<i64: 1, 8, 1>}, {transform_indices = @transform_1, window_bounds = array<i64: 1, 1, 8>}, {pipeline_mode = #tpu.pipeline_mode<synchronous>, transform_indices = @transform_2, window_bounds = array<i64: 128, 32>}, {pipeline_mode = #tpu.pipeline_mode<synchronous>, transform_indices = @transform_3, window_bounds = array<i64: 16, 32>}, {pipeline_mode = #tpu.pipeline_mode<synchronous>, transform_indices = @transform_4, window_bounds = array<i64: 2, 32>}, {pipeline_mode = #tpu.pipeline_mode<synchronous>, transform_indices = @transform_5, window_bounds = array<i64: 1, 32>}, {pipeline_mode = #tpu.pipeline_mode<synchronous>, transform_indices = @transform_6, window_bounds = array<i64: 1, 32>}, {pipeline_mode = #tpu.pipeline_mode<synchronous>, transform_indices = @transform_7, window_bounds = array<i64: 2, 32, 96>}, {pipeline_mode = #tpu.pipeline_mode<synchronous>, transform_indices = @transform_8, window_bounds = array<i64: 2, 1, 96>}, {pipeline_mode = #tpu.pipeline_mode<synchronous>, transform_indices = @transform_9, window_bounds = array<i64: 2, 32, 32>}, {pipeline_mode = #tpu.pipeline_mode<synchronous>, transform_indices = @transform_10, window_bounds = array<i64: 2, 1, 32>}, {pipeline_mode = #tpu.pipeline_mode<synchronous>, transform_indices = @transform_11, window_bounds = array<i64: 2, 1, 32>}, {pipeline_mode = #tpu.pipeline_mode<synchronous>, transform_indices = @transform_12, window_bounds = array<i64: 2, 1, 32>}, {pipeline_mode = #tpu.pipeline_mode<synchronous>, transform_indices = @transform_13, window_bounds = array<i64: 2, 32, 64>}, {pipeline_mode = #tpu.pipeline_mode<synchronous>, transform_indices = @transform_14, window_bounds = array<i64: 2, 1, 64>}, {pipeline_mode = #tpu.pipeline_mode<synchronous>, transform_indices = @transform_15, window_bounds = array<i64: 2, 64, 32>}, {pipeline_mode = #tpu.pipeline_mode<synchronous>, transform_indices = @transform_16, window_bounds = array<i64: 2, 1, 32>}, {pipeline_mode = #tpu.pipeline_mode<synchronous>, transform_indices = @transform_17, window_bounds = array<i64: 2, 1, 32>}, {pipeline_mode = #tpu.pipeline_mode<synchronous>, transform_indices = @transform_18, window_bounds = array<i64: 2, 1, 32>}, {pipeline_mode = #tpu.pipeline_mode<synchronous>, transform_indices = @transform_19, window_bounds = array<i64: 32, 32>}, {pipeline_mode = #tpu.pipeline_mode<synchronous>, transform_indices = @transform_20, window_bounds = array<i64: 1, 32>}, {transform_indices = @transform_21, window_bounds = array<i64: 1, 8, 32>}, {transform_indices = @transform_22, window_bounds = array<i64: 1, 1, 32>}]} {
    %c0 = arith.constant 0 : index
    %c0_0 = arith.constant 0 : index
    %c0_1 = arith.constant 0 : index
    %0 = vector.load %arg1[%c0, %c0_0, %c0_1] : memref<1x8x1xi32, #tpu.memory_space<vmem>>, vector<1x8x1xi32>
    %1 = vector.shape_cast %0 : vector<1x8x1xi32> to vector<8x1xi32>
    %2 = tpu.iota {dimensions = array<i32: 1>} : vector<8x128xi32>
    %3 = vector.broadcast %1 : vector<8x1xi32> to vector<8x128xi32>
    %4 = arith.cmpi eq, %2, %3 : vector<8x128xi32>
    %5 = arith.extui %4 : vector<8x128xi1> to vector<8x128xi32>
    %6 = arith.sitofp %5 : vector<8x128xi32> to vector<8x128xf32>
    %7 = arith.truncf %6 : vector<8x128xf32> to vector<8x128xbf16>
    %c0_2 = arith.constant 0 : index
    %c0_3 = arith.constant 0 : index
    %8 = vector.load %arg3[%c0_2, %c0_3] : memref<128x32xbf16, #tpu.memory_space<vmem>>, vector<128x32xbf16>
    %cst = arith.constant dense<0.000000e+00> : vector<8x32xf32>
    %9 = tpu.matmul %7, %8, %cst {dimension_numbers = #tpu.dot_dimension_numbers<[1], [0], [0], [1], [0, 0, 1, 1], [], []>} : vector<8x128xbf16>, vector<128x32xbf16>, vector<8x32xf32> -> vector<8x32xf32>
    %c0_4 = arith.constant 0 : index
    %c0_5 = arith.constant 0 : index
    %10 = vector.load %arg4[%c0_4, %c0_5] : memref<16x32xbf16, #tpu.memory_space<vmem>>, vector<8x32xbf16>
    %11 = arith.extf %10 : vector<8x32xbf16> to vector<8x32xf32>
    %c0_6 = arith.constant 0 : index
    %c0_7 = arith.constant 0 : index
    %12 = vector.load %arg5[%c0_6, %c0_7] : memref<2x32xbf16, #tpu.memory_space<vmem>>, vector<1x32xbf16>
    %13 = arith.extf %12 : vector<1x32xbf16> to vector<1x32xf32>
    %14 = arith.addf %9, %11 : vector<8x32xf32>
    %15 = vector.broadcast %13 : vector<1x32xf32> to vector<8x32xf32>
    %16 = arith.addf %14, %15 : vector<8x32xf32>
    %c0_8 = arith.constant 0 : index
    %c0_9 = arith.constant 0 : index
    %17 = vector.load %arg6[%c0_8, %c0_9] : memref<1x32xf32, #tpu.memory_space<vmem>>, vector<1x32xf32>
    %c0_10 = arith.constant 0 : index
    %c0_11 = arith.constant 0 : index
    %18 = vector.load %arg7[%c0_10, %c0_11] : memref<1x32xf32, #tpu.memory_space<vmem>>, vector<1x32xf32>
    %cst_12 = arith.constant dense<0.000000e+00> : vector<8xf32>
    %19 = vector.multi_reduction <add>, %16, %cst_12 [1] : vector<8x32xf32> to vector<8xf32>
    %20 = vector.shape_cast %19 : vector<8xf32> to vector<8x1xf32>
    %cst_13 = arith.constant 3.200000e+01 : f32
    %21 = vector.broadcast %cst_13 : f32 to vector<8x1xf32>
    %22 = arith.divf %20, %21 : vector<8x1xf32>
    %23 = vector.broadcast %22 : vector<8x1xf32> to vector<8x32xf32>
    %24 = arith.subf %16, %23 : vector<8x32xf32>
    %25 = arith.mulf %24, %24 : vector<8x32xf32>
    %cst_14 = arith.constant dense<0.000000e+00> : vector<8xf32>
    %26 = vector.multi_reduction <add>, %25, %cst_14 [1] : vector<8x32xf32> to vector<8xf32>
    %27 = vector.shape_cast %26 : vector<8xf32> to vector<8x1xf32>
    %cst_15 = arith.constant 3.200000e+01 : f32
    %28 = vector.broadcast %cst_15 : f32 to vector<8x1xf32>
    %29 = arith.divf %27, %28 : vector<8x1xf32>
    %cst_16 = arith.constant 9.99999996E-13 : f32
    %30 = vector.broadcast %cst_16 : f32 to vector<8x1xf32>
    %31 = arith.addf %29, %30 : vector<8x1xf32>
    %32 = math.rsqrt %31 : vector<8x1xf32>
    %33 = vector.broadcast %32 : vector<8x1xf32> to vector<8x32xf32>
    %34 = arith.mulf %24, %33 : vector<8x32xf32>
    %35 = vector.broadcast %17 : vector<1x32xf32> to vector<8x32xf32>
    %36 = arith.mulf %34, %35 : vector<8x32xf32>
    %37 = vector.broadcast %18 : vector<1x32xf32> to vector<8x32xf32>
    %38 = arith.addf %36, %37 : vector<8x32xf32>
    %c0_17 = arith.constant 0 : index
    %c0_18 = arith.constant 0 : index
    %c0_19 = arith.constant 0 : index
    %39 = vector.load %arg2[%c0_17, %c0_18, %c0_19] : memref<1x1x8xf32, #tpu.memory_space<vmem>>, vector<1x1x8xf32>
    %40 = vector.shape_cast %39 : vector<1x1x8xf32> to vector<1x8xf32>
    %cst_20 = arith.constant 5.000000e-01 : f32
    %41 = vector.broadcast %cst_20 : f32 to vector<1x8xf32>
    %42 = arith.cmpf ogt, %40, %41 : vector<1x8xf32>
    %cst_21 = arith.constant 0.000000e+00 : f32
    %cst_22 = arith.constant -1.000000e+09 : f32
    %43 = vector.broadcast %cst_21 : f32 to vector<1x8xf32>
    %44 = vector.broadcast %cst_22 : f32 to vector<1x8xf32>
    %45 = arith.select %42, %43, %44 : vector<1x8xi1>, vector<1x8xf32>
    %46 = vector.shape_cast %45 : vector<1x8xf32> to vector<1x1x8xf32>
    %47 = arith.truncf %38 : vector<8x32xf32> to vector<8x32xbf16>
    %c0_23 = arith.constant 0 : index
    %c0_24 = arith.constant 0 : index
    %c0_25 = arith.constant 0 : index
    %48 = vector.load %arg8[%c0_23, %c0_24, %c0_25] : memref<2x32x96xbf16, #tpu.memory_space<vmem>>, vector<1x32x96xbf16>
    %49 = vector.shape_cast %48 : vector<1x32x96xbf16> to vector<32x96xbf16>
    %cst_26 = arith.constant dense<0.000000e+00> : vector<8x96xf32>
    %50 = tpu.matmul %47, %49, %cst_26 {dimension_numbers = #tpu.dot_dimension_numbers<[1], [0], [0], [1], [0, 0, 1, 1], [], []>} : vector<8x32xbf16>, vector<32x96xbf16>, vector<8x96xf32> -> vector<8x96xf32>
    %c0_27 = arith.constant 0 : index
    %c0_28 = arith.constant 0 : index
    %c0_29 = arith.constant 0 : index
    %51 = vector.load %arg9[%c0_27, %c0_28, %c0_29] : memref<2x1x96xf32, #tpu.memory_space<vmem>>, vector<1x1x96xf32>
    %52 = vector.shape_cast %51 : vector<1x1x96xf32> to vector<1x96xf32>
    %53 = vector.broadcast %52 : vector<1x96xf32> to vector<8x96xf32>
    %54 = arith.addf %50, %53 : vector<8x96xf32>
    %55 = arith.truncf %54 : vector<8x96xf32> to vector<8x96xbf16>
    %56 = vector.extract_strided_slice %55 {offsets = [0, 0], sizes = [8, 32], strides = [1, 1]} : vector<8x96xbf16> to vector<8x32xbf16>
    %57 = vector.shape_cast %56 : vector<8x32xbf16> to vector<8x4x8xbf16>
    %58 = tpu.transpose %57, [1, 0, 2] : vector<8x4x8xbf16> -> vector<4x8x8xbf16>
    %59 = vector.extract_strided_slice %55 {offsets = [0, 32], sizes = [8, 32], strides = [1, 1]} : vector<8x96xbf16> to vector<8x32xbf16>
    %60 = vector.shape_cast %59 : vector<8x32xbf16> to vector<8x4x8xbf16>
    %61 = tpu.transpose %60, [1, 0, 2] : vector<8x4x8xbf16> -> vector<4x8x8xbf16>
    %62 = vector.extract_strided_slice %55 {offsets = [0, 64], sizes = [8, 32], strides = [1, 1]} : vector<8x96xbf16> to vector<8x32xbf16>
    %63 = vector.shape_cast %62 : vector<8x32xbf16> to vector<8x4x8xbf16>
    %64 = tpu.transpose %63, [1, 0, 2] : vector<8x4x8xbf16> -> vector<4x8x8xbf16>
    "tpu.trace_start"() <{level = 10 : i32, message = "hqd,hkd->hqk"}> : () -> ()
    %cst_30 = arith.constant dense<0.000000e+00> : vector<4x8x8xf32>
    %65 = tpu.matmul %58, %61, %cst_30 {dimension_numbers = #tpu.dot_dimension_numbers<[2], [2], [1], [1], [0, 0, 0, 1, 1, 1], [0], [0]>} : vector<4x8x8xbf16>, vector<4x8x8xbf16>, vector<4x8x8xf32> -> vector<4x8x8xf32>
    "tpu.trace_stop"() : () -> ()
    %cst_31 = arith.constant 0.353553385 : f32
    %66 = vector.broadcast %cst_31 : f32 to vector<4x8x8xf32>
    %67 = arith.mulf %65, %66 : vector<4x8x8xf32>
    %68 = vector.broadcast %46 : vector<1x1x8xf32> to vector<4x8x8xf32>
    %69 = arith.addf %67, %68 : vector<4x8x8xf32>
    %cst_32 = arith.constant dense<0xFF800000> : vector<4x8xf32>
    %70 = vector.multi_reduction <maximumf>, %69, %cst_32 [2] : vector<4x8x8xf32> to vector<4x8xf32>
    %71 = vector.shape_cast %70 : vector<4x8xf32> to vector<4x8x1xf32>
    %72 = vector.broadcast %71 : vector<4x8x1xf32> to vector<4x8x8xf32>
    %73 = arith.subf %69, %72 : vector<4x8x8xf32>
    %74 = math.exp %73 : vector<4x8x8xf32>
    %cst_33 = arith.constant dense<0.000000e+00> : vector<4x8xf32>
    %75 = vector.multi_reduction <add>, %74, %cst_33 [2] : vector<4x8x8xf32> to vector<4x8xf32>
    %76 = vector.shape_cast %75 : vector<4x8xf32> to vector<4x8x1xf32>
    %77 = tpu.reciprocal %76 {approx = true} : vector<4x8x1xf32> -> vector<4x8x1xf32>
    %78 = vector.broadcast %77 : vector<4x8x1xf32> to vector<4x8x8xf32>
    %79 = arith.mulf %74, %78 : vector<4x8x8xf32>
    %80 = arith.truncf %79 : vector<4x8x8xf32> to vector<4x8x8xbf16>
    "tpu.trace_start"() <{level = 10 : i32, message = "hqk,hkd->hqd"}> : () -> ()
    %cst_34 = arith.constant dense<0.000000e+00> : vector<4x8x8xf32>
    %81 = tpu.matmul %80, %64, %cst_34 {dimension_numbers = #tpu.dot_dimension_numbers<[2], [1], [1], [2], [0, 0, 0, 1, 1, 2], [0], [0]>} : vector<4x8x8xbf16>, vector<4x8x8xbf16>, vector<4x8x8xf32> -> vector<4x8x8xf32>
    "tpu.trace_stop"() : () -> ()
    %82 = tpu.transpose %81, [1, 0, 2] : vector<4x8x8xf32> -> vector<8x4x8xf32>
    %83 = vector.shape_cast %82 : vector<8x4x8xf32> to vector<8x32xf32>
    %84 = arith.truncf %83 : vector<8x32xf32> to vector<8x32xbf16>
    %c0_35 = arith.constant 0 : index
    %c0_36 = arith.constant 0 : index
    %c0_37 = arith.constant 0 : index
    %85 = vector.load %arg10[%c0_35, %c0_36, %c0_37] : memref<2x32x32xbf16, #tpu.memory_space<vmem>>, vector<1x32x32xbf16>
    %86 = vector.shape_cast %85 : vector<1x32x32xbf16> to vector<32x32xbf16>
    %cst_38 = arith.constant dense<0.000000e+00> : vector<8x32xf32>
    %87 = tpu.matmul %84, %86, %cst_38 {dimension_numbers = #tpu.dot_dimension_numbers<[1], [0], [0], [1], [0, 0, 1, 1], [], []>} : vector<8x32xbf16>, vector<32x32xbf16>, vector<8x32xf32> -> vector<8x32xf32>
    %c0_39 = arith.constant 0 : index
    %c0_40 = arith.constant 0 : index
    %c0_41 = arith.constant 0 : index
    %88 = vector.load %arg11[%c0_39, %c0_40, %c0_41] : memref<2x1x32xf32, #tpu.memory_space<vmem>>, vector<1x1x32xf32>
    %89 = vector.shape_cast %88 : vector<1x1x32xf32> to vector<1x32xf32>
    %90 = vector.broadcast %89 : vector<1x32xf32> to vector<8x32xf32>
    %91 = arith.addf %87, %90 : vector<8x32xf32>
    %92 = arith.addf %38, %91 : vector<8x32xf32>
    %c0_42 = arith.constant 0 : index
    %c0_43 = arith.constant 0 : index
    %c0_44 = arith.constant 0 : index
    %93 = vector.load %arg12[%c0_42, %c0_43, %c0_44] : memref<2x1x32xf32, #tpu.memory_space<vmem>>, vector<1x1x32xf32>
    %94 = vector.shape_cast %93 : vector<1x1x32xf32> to vector<1x32xf32>
    %c0_45 = arith.constant 0 : index
    %c0_46 = arith.constant 0 : index
    %c0_47 = arith.constant 0 : index
    %95 = vector.load %arg13[%c0_45, %c0_46, %c0_47] : memref<2x1x32xf32, #tpu.memory_space<vmem>>, vector<1x1x32xf32>
    %96 = vector.shape_cast %95 : vector<1x1x32xf32> to vector<1x32xf32>
    %cst_48 = arith.constant dense<0.000000e+00> : vector<8xf32>
    %97 = vector.multi_reduction <add>, %92, %cst_48 [1] : vector<8x32xf32> to vector<8xf32>
    %98 = vector.shape_cast %97 : vector<8xf32> to vector<8x1xf32>
    %cst_49 = arith.constant 3.200000e+01 : f32
    %99 = vector.broadcast %cst_49 : f32 to vector<8x1xf32>
    %100 = arith.divf %98, %99 : vector<8x1xf32>
    %101 = vector.broadcast %100 : vector<8x1xf32> to vector<8x32xf32>
    %102 = arith.subf %92, %101 : vector<8x32xf32>
    %103 = arith.mulf %102, %102 : vector<8x32xf32>
    %cst_50 = arith.constant dense<0.000000e+00> : vector<8xf32>
    %104 = vector.multi_reduction <add>, %103, %cst_50 [1] : vector<8x32xf32> to vector<8xf32>
    %105 = vector.shape_cast %104 : vector<8xf32> to vector<8x1xf32>
    %cst_51 = arith.constant 3.200000e+01 : f32
    %106 = vector.broadcast %cst_51 : f32 to vector<8x1xf32>
    %107 = arith.divf %105, %106 : vector<8x1xf32>
    %cst_52 = arith.constant 9.99999996E-13 : f32
    %108 = vector.broadcast %cst_52 : f32 to vector<8x1xf32>
    %109 = arith.addf %107, %108 : vector<8x1xf32>
    %110 = math.rsqrt %109 : vector<8x1xf32>
    %111 = vector.broadcast %110 : vector<8x1xf32> to vector<8x32xf32>
    %112 = arith.mulf %102, %111 : vector<8x32xf32>
    %113 = vector.broadcast %94 : vector<1x32xf32> to vector<8x32xf32>
    %114 = arith.mulf %112, %113 : vector<8x32xf32>
    %115 = vector.broadcast %96 : vector<1x32xf32> to vector<8x32xf32>
    %116 = arith.addf %114, %115 : vector<8x32xf32>
    %117 = arith.truncf %116 : vector<8x32xf32> to vector<8x32xbf16>
    %c0_53 = arith.constant 0 : index
    %c0_54 = arith.constant 0 : index
    %c0_55 = arith.constant 0 : index
    %118 = vector.load %arg14[%c0_53, %c0_54, %c0_55] : memref<2x32x64xbf16, #tpu.memory_space<vmem>>, vector<1x32x64xbf16>
    %119 = vector.shape_cast %118 : vector<1x32x64xbf16> to vector<32x64xbf16>
    %cst_56 = arith.constant dense<0.000000e+00> : vector<8x64xf32>
    %120 = tpu.matmul %117, %119, %cst_56 {dimension_numbers = #tpu.dot_dimension_numbers<[1], [0], [0], [1], [0, 0, 1, 1], [], []>} : vector<8x32xbf16>, vector<32x64xbf16>, vector<8x64xf32> -> vector<8x64xf32>
    %c0_57 = arith.constant 0 : index
    %c0_58 = arith.constant 0 : index
    %c0_59 = arith.constant 0 : index
    %121 = vector.load %arg15[%c0_57, %c0_58, %c0_59] : memref<2x1x64xf32, #tpu.memory_space<vmem>>, vector<1x1x64xf32>
    %122 = vector.shape_cast %121 : vector<1x1x64xf32> to vector<1x64xf32>
    %123 = vector.broadcast %122 : vector<1x64xf32> to vector<8x64xf32>
    %124 = arith.addf %120, %123 : vector<8x64xf32>
    %cst_60 = arith.constant 5.000000e-01 : f32
    %125 = vector.broadcast %cst_60 : f32 to vector<8x64xf32>
    %126 = arith.mulf %125, %124 : vector<8x64xf32>
    %cst_61 = arith.constant 4.471500e-02 : f32
    %127 = vector.broadcast %cst_61 : f32 to vector<8x64xf32>
    %128 = arith.mulf %127, %124 : vector<8x64xf32>
    %129 = arith.mulf %128, %124 : vector<8x64xf32>
    %130 = arith.mulf %129, %124 : vector<8x64xf32>
    %131 = arith.addf %124, %130 : vector<8x64xf32>
    %cst_62 = arith.constant 0.797884583 : f32
    %132 = vector.broadcast %cst_62 : f32 to vector<8x64xf32>
    %133 = arith.mulf %132, %131 : vector<8x64xf32>
    %134 = math.tanh %133 : vector<8x64xf32>
    %cst_63 = arith.constant 1.000000e+00 : f32
    %135 = vector.broadcast %cst_63 : f32 to vector<8x64xf32>
    %136 = arith.addf %135, %134 : vector<8x64xf32>
    %137 = arith.mulf %126, %136 : vector<8x64xf32>
    %138 = arith.truncf %137 : vector<8x64xf32> to vector<8x64xbf16>
    %c0_64 = arith.constant 0 : index
    %c0_65 = arith.constant 0 : index
    %c0_66 = arith.constant 0 : index
    %139 = vector.load %arg16[%c0_64, %c0_65, %c0_66] : memref<2x64x32xbf16, #tpu.memory_space<vmem>>, vector<1x64x32xbf16>
    %140 = vector.shape_cast %139 : vector<1x64x32xbf16> to vector<64x32xbf16>
    %cst_67 = arith.constant dense<0.000000e+00> : vector<8x32xf32>
    %141 = tpu.matmul %138, %140, %cst_67 {dimension_numbers = #tpu.dot_dimension_numbers<[1], [0], [0], [1], [0, 0, 1, 1], [], []>} : vector<8x64xbf16>, vector<64x32xbf16>, vector<8x32xf32> -> vector<8x32xf32>
    %c0_68 = arith.constant 0 : index
    %c0_69 = arith.constant 0 : index
    %c0_70 = arith.constant 0 : index
    %142 = vector.load %arg17[%c0_68, %c0_69, %c0_70] : memref<2x1x32xf32, #tpu.memory_space<vmem>>, vector<1x1x32xf32>
    %143 = vector.shape_cast %142 : vector<1x1x32xf32> to vector<1x32xf32>
    %144 = vector.broadcast %143 : vector<1x32xf32> to vector<8x32xf32>
    %145 = arith.addf %141, %144 : vector<8x32xf32>
    %146 = arith.addf %116, %145 : vector<8x32xf32>
    %c0_71 = arith.constant 0 : index
    %c0_72 = arith.constant 0 : index
    %c0_73 = arith.constant 0 : index
    %147 = vector.load %arg18[%c0_71, %c0_72, %c0_73] : memref<2x1x32xf32, #tpu.memory_space<vmem>>, vector<1x1x32xf32>
    %148 = vector.shape_cast %147 : vector<1x1x32xf32> to vector<1x32xf32>
    %c0_74 = arith.constant 0 : index
    %c0_75 = arith.constant 0 : index
    %c0_76 = arith.constant 0 : index
    %149 = vector.load %arg19[%c0_74, %c0_75, %c0_76] : memref<2x1x32xf32, #tpu.memory_space<vmem>>, vector<1x1x32xf32>
    %150 = vector.shape_cast %149 : vector<1x1x32xf32> to vector<1x32xf32>
    %cst_77 = arith.constant dense<0.000000e+00> : vector<8xf32>
    %151 = vector.multi_reduction <add>, %146, %cst_77 [1] : vector<8x32xf32> to vector<8xf32>
    %152 = vector.shape_cast %151 : vector<8xf32> to vector<8x1xf32>
    %cst_78 = arith.constant 3.200000e+01 : f32
    %153 = vector.broadcast %cst_78 : f32 to vector<8x1xf32>
    %154 = arith.divf %152, %153 : vector<8x1xf32>
    %155 = vector.broadcast %154 : vector<8x1xf32> to vector<8x32xf32>
    %156 = arith.subf %146, %155 : vector<8x32xf32>
    %157 = arith.mulf %156, %156 : vector<8x32xf32>
    %cst_79 = arith.constant dense<0.000000e+00> : vector<8xf32>
    %158 = vector.multi_reduction <add>, %157, %cst_79 [1] : vector<8x32xf32> to vector<8xf32>
    %159 = vector.shape_cast %158 : vector<8xf32> to vector<8x1xf32>
    %cst_80 = arith.constant 3.200000e+01 : f32
    %160 = vector.broadcast %cst_80 : f32 to vector<8x1xf32>
    %161 = arith.divf %159, %160 : vector<8x1xf32>
    %cst_81 = arith.constant 9.99999996E-13 : f32
    %162 = vector.broadcast %cst_81 : f32 to vector<8x1xf32>
    %163 = arith.addf %161, %162 : vector<8x1xf32>
    %164 = math.rsqrt %163 : vector<8x1xf32>
    %165 = vector.broadcast %164 : vector<8x1xf32> to vector<8x32xf32>
    %166 = arith.mulf %156, %165 : vector<8x32xf32>
    %167 = vector.broadcast %148 : vector<1x32xf32> to vector<8x32xf32>
    %168 = arith.mulf %166, %167 : vector<8x32xf32>
    %169 = vector.broadcast %150 : vector<1x32xf32> to vector<8x32xf32>
    %170 = arith.addf %168, %169 : vector<8x32xf32>
    %171 = arith.truncf %170 : vector<8x32xf32> to vector<8x32xbf16>
    %c1 = arith.constant 1 : index
    %c0_82 = arith.constant 0 : index
    %c0_83 = arith.constant 0 : index
    %172 = vector.load %arg8[%c1, %c0_82, %c0_83] : memref<2x32x96xbf16, #tpu.memory_space<vmem>>, vector<1x32x96xbf16>
    %173 = vector.shape_cast %172 : vector<1x32x96xbf16> to vector<32x96xbf16>
    %cst_84 = arith.constant dense<0.000000e+00> : vector<8x96xf32>
    %174 = tpu.matmul %171, %173, %cst_84 {dimension_numbers = #tpu.dot_dimension_numbers<[1], [0], [0], [1], [0, 0, 1, 1], [], []>} : vector<8x32xbf16>, vector<32x96xbf16>, vector<8x96xf32> -> vector<8x96xf32>
    %c1_85 = arith.constant 1 : index
    %c0_86 = arith.constant 0 : index
    %c0_87 = arith.constant 0 : index
    %175 = vector.load %arg9[%c1_85, %c0_86, %c0_87] : memref<2x1x96xf32, #tpu.memory_space<vmem>>, vector<1x1x96xf32>
    %176 = vector.shape_cast %175 : vector<1x1x96xf32> to vector<1x96xf32>
    %177 = vector.broadcast %176 : vector<1x96xf32> to vector<8x96xf32>
    %178 = arith.addf %174, %177 : vector<8x96xf32>
    %179 = arith.truncf %178 : vector<8x96xf32> to vector<8x96xbf16>
    %180 = vector.extract_strided_slice %179 {offsets = [0, 0], sizes = [8, 32], strides = [1, 1]} : vector<8x96xbf16> to vector<8x32xbf16>
    %181 = vector.shape_cast %180 : vector<8x32xbf16> to vector<8x4x8xbf16>
    %182 = tpu.transpose %181, [1, 0, 2] : vector<8x4x8xbf16> -> vector<4x8x8xbf16>
    %183 = vector.extract_strided_slice %179 {offsets = [0, 32], sizes = [8, 32], strides = [1, 1]} : vector<8x96xbf16> to vector<8x32xbf16>
    %184 = vector.shape_cast %183 : vector<8x32xbf16> to vector<8x4x8xbf16>
    %185 = tpu.transpose %184, [1, 0, 2] : vector<8x4x8xbf16> -> vector<4x8x8xbf16>
    %186 = vector.extract_strided_slice %179 {offsets = [0, 64], sizes = [8, 32], strides = [1, 1]} : vector<8x96xbf16> to vector<8x32xbf16>
    %187 = vector.shape_cast %186 : vector<8x32xbf16> to vector<8x4x8xbf16>
    %188 = tpu.transpose %187, [1, 0, 2] : vector<8x4x8xbf16> -> vector<4x8x8xbf16>
    "tpu.trace_start"() <{level = 10 : i32, message = "hqd,hkd->hqk"}> : () -> ()
    %cst_88 = arith.constant dense<0.000000e+00> : vector<4x8x8xf32>
    %189 = tpu.matmul %182, %185, %cst_88 {dimension_numbers = #tpu.dot_dimension_numbers<[2], [2], [1], [1], [0, 0, 0, 1, 1, 1], [0], [0]>} : vector<4x8x8xbf16>, vector<4x8x8xbf16>, vector<4x8x8xf32> -> vector<4x8x8xf32>
    "tpu.trace_stop"() : () -> ()
    %cst_89 = arith.constant 0.353553385 : f32
    %190 = vector.broadcast %cst_89 : f32 to vector<4x8x8xf32>
    %191 = arith.mulf %189, %190 : vector<4x8x8xf32>
    %192 = vector.broadcast %46 : vector<1x1x8xf32> to vector<4x8x8xf32>
    %193 = arith.addf %191, %192 : vector<4x8x8xf32>
    %cst_90 = arith.constant dense<0xFF800000> : vector<4x8xf32>
    %194 = vector.multi_reduction <maximumf>, %193, %cst_90 [2] : vector<4x8x8xf32> to vector<4x8xf32>
    %195 = vector.shape_cast %194 : vector<4x8xf32> to vector<4x8x1xf32>
    %196 = vector.broadcast %195 : vector<4x8x1xf32> to vector<4x8x8xf32>
    %197 = arith.subf %193, %196 : vector<4x8x8xf32>
    %198 = math.exp %197 : vector<4x8x8xf32>
    %cst_91 = arith.constant dense<0.000000e+00> : vector<4x8xf32>
    %199 = vector.multi_reduction <add>, %198, %cst_91 [2] : vector<4x8x8xf32> to vector<4x8xf32>
    %200 = vector.shape_cast %199 : vector<4x8xf32> to vector<4x8x1xf32>
    %201 = tpu.reciprocal %200 {approx = true} : vector<4x8x1xf32> -> vector<4x8x1xf32>
    %202 = vector.broadcast %201 : vector<4x8x1xf32> to vector<4x8x8xf32>
    %203 = arith.mulf %198, %202 : vector<4x8x8xf32>
    %204 = arith.truncf %203 : vector<4x8x8xf32> to vector<4x8x8xbf16>
    "tpu.trace_start"() <{level = 10 : i32, message = "hqk,hkd->hqd"}> : () -> ()
    %cst_92 = arith.constant dense<0.000000e+00> : vector<4x8x8xf32>
    %205 = tpu.matmul %204, %188, %cst_92 {dimension_numbers = #tpu.dot_dimension_numbers<[2], [1], [1], [2], [0, 0, 0, 1, 1, 2], [0], [0]>} : vector<4x8x8xbf16>, vector<4x8x8xbf16>, vector<4x8x8xf32> -> vector<4x8x8xf32>
    "tpu.trace_stop"() : () -> ()
    %206 = tpu.transpose %205, [1, 0, 2] : vector<4x8x8xf32> -> vector<8x4x8xf32>
    %207 = vector.shape_cast %206 : vector<8x4x8xf32> to vector<8x32xf32>
    %208 = arith.truncf %207 : vector<8x32xf32> to vector<8x32xbf16>
    %c1_93 = arith.constant 1 : index
    %c0_94 = arith.constant 0 : index
    %c0_95 = arith.constant 0 : index
    %209 = vector.load %arg10[%c1_93, %c0_94, %c0_95] : memref<2x32x32xbf16, #tpu.memory_space<vmem>>, vector<1x32x32xbf16>
    %210 = vector.shape_cast %209 : vector<1x32x32xbf16> to vector<32x32xbf16>
    %cst_96 = arith.constant dense<0.000000e+00> : vector<8x32xf32>
    %211 = tpu.matmul %208, %210, %cst_96 {dimension_numbers = #tpu.dot_dimension_numbers<[1], [0], [0], [1], [0, 0, 1, 1], [], []>} : vector<8x32xbf16>, vector<32x32xbf16>, vector<8x32xf32> -> vector<8x32xf32>
    %c1_97 = arith.constant 1 : index
    %c0_98 = arith.constant 0 : index
    %c0_99 = arith.constant 0 : index
    %212 = vector.load %arg11[%c1_97, %c0_98, %c0_99] : memref<2x1x32xf32, #tpu.memory_space<vmem>>, vector<1x1x32xf32>
    %213 = vector.shape_cast %212 : vector<1x1x32xf32> to vector<1x32xf32>
    %214 = vector.broadcast %213 : vector<1x32xf32> to vector<8x32xf32>
    %215 = arith.addf %211, %214 : vector<8x32xf32>
    %216 = arith.addf %170, %215 : vector<8x32xf32>
    %c1_100 = arith.constant 1 : index
    %c0_101 = arith.constant 0 : index
    %c0_102 = arith.constant 0 : index
    %217 = vector.load %arg12[%c1_100, %c0_101, %c0_102] : memref<2x1x32xf32, #tpu.memory_space<vmem>>, vector<1x1x32xf32>
    %218 = vector.shape_cast %217 : vector<1x1x32xf32> to vector<1x32xf32>
    %c1_103 = arith.constant 1 : index
    %c0_104 = arith.constant 0 : index
    %c0_105 = arith.constant 0 : index
    %219 = vector.load %arg13[%c1_103, %c0_104, %c0_105] : memref<2x1x32xf32, #tpu.memory_space<vmem>>, vector<1x1x32xf32>
    %220 = vector.shape_cast %219 : vector<1x1x32xf32> to vector<1x32xf32>
    %cst_106 = arith.constant dense<0.000000e+00> : vector<8xf32>
    %221 = vector.multi_reduction <add>, %216, %cst_106 [1] : vector<8x32xf32> to vector<8xf32>
    %222 = vector.shape_cast %221 : vector<8xf32> to vector<8x1xf32>
    %cst_107 = arith.constant 3.200000e+01 : f32
    %223 = vector.broadcast %cst_107 : f32 to vector<8x1xf32>
    %224 = arith.divf %222, %223 : vector<8x1xf32>
    %225 = vector.broadcast %224 : vector<8x1xf32> to vector<8x32xf32>
    %226 = arith.subf %216, %225 : vector<8x32xf32>
    %227 = arith.mulf %226, %226 : vector<8x32xf32>
    %cst_108 = arith.constant dense<0.000000e+00> : vector<8xf32>
    %228 = vector.multi_reduction <add>, %227, %cst_108 [1] : vector<8x32xf32> to vector<8xf32>
    %229 = vector.shape_cast %228 : vector<8xf32> to vector<8x1xf32>
    %cst_109 = arith.constant 3.200000e+01 : f32
    %230 = vector.broadcast %cst_109 : f32 to vector<8x1xf32>
    %231 = arith.divf %229, %230 : vector<8x1xf32>
    %cst_110 = arith.constant 9.99999996E-13 : f32
    %232 = vector.broadcast %cst_110 : f32 to vector<8x1xf32>
    %233 = arith.addf %231, %232 : vector<8x1xf32>
    %234 = math.rsqrt %233 : vector<8x1xf32>
    %235 = vector.broadcast %234 : vector<8x1xf32> to vector<8x32xf32>
    %236 = arith.mulf %226, %235 : vector<8x32xf32>
    %237 = vector.broadcast %218 : vector<1x32xf32> to vector<8x32xf32>
    %238 = arith.mulf %236, %237 : vector<8x32xf32>
    %239 = vector.broadcast %220 : vector<1x32xf32> to vector<8x32xf32>
    %240 = arith.addf %238, %239 : vector<8x32xf32>
    %241 = arith.truncf %240 : vector<8x32xf32> to vector<8x32xbf16>
    %c1_111 = arith.constant 1 : index
    %c0_112 = arith.constant 0 : index
    %c0_113 = arith.constant 0 : index
    %242 = vector.load %arg14[%c1_111, %c0_112, %c0_113] : memref<2x32x64xbf16, #tpu.memory_space<vmem>>, vector<1x32x64xbf16>
    %243 = vector.shape_cast %242 : vector<1x32x64xbf16> to vector<32x64xbf16>
    %cst_114 = arith.constant dense<0.000000e+00> : vector<8x64xf32>
    %244 = tpu.matmul %241, %243, %cst_114 {dimension_numbers = #tpu.dot_dimension_numbers<[1], [0], [0], [1], [0, 0, 1, 1], [], []>} : vector<8x32xbf16>, vector<32x64xbf16>, vector<8x64xf32> -> vector<8x64xf32>
    %c1_115 = arith.constant 1 : index
    %c0_116 = arith.constant 0 : index
    %c0_117 = arith.constant 0 : index
    %245 = vector.load %arg15[%c1_115, %c0_116, %c0_117] : memref<2x1x64xf32, #tpu.memory_space<vmem>>, vector<1x1x64xf32>
    %246 = vector.shape_cast %245 : vector<1x1x64xf32> to vector<1x64xf32>
    %247 = vector.broadcast %246 : vector<1x64xf32> to vector<8x64xf32>
    %248 = arith.addf %244, %247 : vector<8x64xf32>
    %cst_118 = arith.constant 5.000000e-01 : f32
    %249 = vector.broadcast %cst_118 : f32 to vector<8x64xf32>
    %250 = arith.mulf %249, %248 : vector<8x64xf32>
    %cst_119 = arith.constant 4.471500e-02 : f32
    %251 = vector.broadcast %cst_119 : f32 to vector<8x64xf32>
    %252 = arith.mulf %251, %248 : vector<8x64xf32>
    %253 = arith.mulf %252, %248 : vector<8x64xf32>
    %254 = arith.mulf %253, %248 : vector<8x64xf32>
    %255 = arith.addf %248, %254 : vector<8x64xf32>
    %cst_120 = arith.constant 0.797884583 : f32
    %256 = vector.broadcast %cst_120 : f32 to vector<8x64xf32>
    %257 = arith.mulf %256, %255 : vector<8x64xf32>
    %258 = math.tanh %257 : vector<8x64xf32>
    %cst_121 = arith.constant 1.000000e+00 : f32
    %259 = vector.broadcast %cst_121 : f32 to vector<8x64xf32>
    %260 = arith.addf %259, %258 : vector<8x64xf32>
    %261 = arith.mulf %250, %260 : vector<8x64xf32>
    %262 = arith.truncf %261 : vector<8x64xf32> to vector<8x64xbf16>
    %c1_122 = arith.constant 1 : index
    %c0_123 = arith.constant 0 : index
    %c0_124 = arith.constant 0 : index
    %263 = vector.load %arg16[%c1_122, %c0_123, %c0_124] : memref<2x64x32xbf16, #tpu.memory_space<vmem>>, vector<1x64x32xbf16>
    %264 = vector.shape_cast %263 : vector<1x64x32xbf16> to vector<64x32xbf16>
    %cst_125 = arith.constant dense<0.000000e+00> : vector<8x32xf32>
    %265 = tpu.matmul %262, %264, %cst_125 {dimension_numbers = #tpu.dot_dimension_numbers<[1], [0], [0], [1], [0, 0, 1, 1], [], []>} : vector<8x64xbf16>, vector<64x32xbf16>, vector<8x32xf32> -> vector<8x32xf32>
    %c1_126 = arith.constant 1 : index
    %c0_127 = arith.constant 0 : index
    %c0_128 = arith.constant 0 : index
    %266 = vector.load %arg17[%c1_126, %c0_127, %c0_128] : memref<2x1x32xf32, #tpu.memory_space<vmem>>, vector<1x1x32xf32>
    %267 = vector.shape_cast %266 : vector<1x1x32xf32> to vector<1x32xf32>
    %268 = vector.broadcast %267 : vector<1x32xf32> to vector<8x32xf32>
    %269 = arith.addf %265, %268 : vector<8x32xf32>
    %270 = arith.addf %240, %269 : vector<8x32xf32>
    %c1_129 = arith.constant 1 : index
    %c0_130 = arith.constant 0 : index
    %c0_131 = arith.constant 0 : index
    %271 = vector.load %arg18[%c1_129, %c0_130, %c0_131] : memref<2x1x32xf32, #tpu.memory_space<vmem>>, vector<1x1x32xf32>
    %272 = vector.shape_cast %271 : vector<1x1x32xf32> to vector<1x32xf32>
    %c1_132 = arith.constant 1 : index
    %c0_133 = arith.constant 0 : index
    %c0_134 = arith.constant 0 : index
    %273 = vector.load %arg19[%c1_132, %c0_133, %c0_134] : memref<2x1x32xf32, #tpu.memory_space<vmem>>, vector<1x1x32xf32>
    %274 = vector.shape_cast %273 : vector<1x1x32xf32> to vector<1x32xf32>
    %cst_135 = arith.constant dense<0.000000e+00> : vector<8xf32>
    %275 = vector.multi_reduction <add>, %270, %cst_135 [1] : vector<8x32xf32> to vector<8xf32>
    %276 = vector.shape_cast %275 : vector<8xf32> to vector<8x1xf32>
    %cst_136 = arith.constant 3.200000e+01 : f32
    %277 = vector.broadcast %cst_136 : f32 to vector<8x1xf32>
    %278 = arith.divf %276, %277 : vector<8x1xf32>
    %279 = vector.broadcast %278 : vector<8x1xf32> to vector<8x32xf32>
    %280 = arith.subf %270, %279 : vector<8x32xf32>
    %281 = arith.mulf %280, %280 : vector<8x32xf32>
    %cst_137 = arith.constant dense<0.000000e+00> : vector<8xf32>
    %282 = vector.multi_reduction <add>, %281, %cst_137 [1] : vector<8x32xf32> to vector<8xf32>
    %283 = vector.shape_cast %282 : vector<8xf32> to vector<8x1xf32>
    %cst_138 = arith.constant 3.200000e+01 : f32
    %284 = vector.broadcast %cst_138 : f32 to vector<8x1xf32>
    %285 = arith.divf %283, %284 : vector<8x1xf32>
    %cst_139 = arith.constant 9.99999996E-13 : f32
    %286 = vector.broadcast %cst_139 : f32 to vector<8x1xf32>
    %287 = arith.addf %285, %286 : vector<8x1xf32>
    %288 = math.rsqrt %287 : vector<8x1xf32>
    %289 = vector.broadcast %288 : vector<8x1xf32> to vector<8x32xf32>
    %290 = arith.mulf %280, %289 : vector<8x32xf32>
    %291 = vector.broadcast %272 : vector<1x32xf32> to vector<8x32xf32>
    %292 = arith.mulf %290, %291 : vector<8x32xf32>
    %293 = vector.broadcast %274 : vector<1x32xf32> to vector<8x32xf32>
    %294 = arith.addf %292, %293 : vector<8x32xf32>
    %c0_140 = arith.constant 0 : index
    %c0_141 = arith.constant 0 : index
    %c0_142 = arith.constant 0 : index
    %295 = vector.load %arg22[%c0_140, %c0_141, %c0_142] : memref<1x8x32xf32, #tpu.memory_space<vmem>>, vector<1x8x32xf32>
    %296 = vector.shape_cast %295 : vector<1x8x32xf32> to vector<8x32xf32>
    %297 = vector.shape_cast %294 : vector<8x32xf32> to vector<1x8x32xf32>
    tpu.vector_store %arg22[%c0_140, %c0_141, %c0_142], %297 {strides = array<i32>} : memref<1x8x32xf32, #tpu.memory_space<vmem>>, vector<1x8x32xf32>,
    %298 = vector.extract_strided_slice %294 {offsets = [0, 0], sizes = [1, 32], strides = [1, 1]} : vector<8x32xf32> to vector<1x32xf32>
    %299 = arith.truncf %298 : vector<1x32xf32> to vector<1x32xbf16>
    %c0_143 = arith.constant 0 : index
    %c0_144 = arith.constant 0 : index
    %300 = vector.load %arg20[%c0_143, %c0_144] : memref<32x32xbf16, #tpu.memory_space<vmem>>, vector<32x32xbf16>
    %cst_145 = arith.constant dense<0.000000e+00> : vector<1x32xf32>
    %301 = tpu.matmul %299, %300, %cst_145 {dimension_numbers = #tpu.dot_dimension_numbers<[1], [0], [0], [1], [0, 0, 1, 1], [], []>} : vector<1x32xbf16>, vector<32x32xbf16>, vector<1x32xf32> -> vector<1x32xf32>
    %c0_146 = arith.constant 0 : index
    %c0_147 = arith.constant 0 : index
    %302 = vector.load %arg21[%c0_146, %c0_147] : memref<1x32xf32, #tpu.memory_space<vmem>>, vector<1x32xf32>
    %303 = arith.addf %301, %302 : vector<1x32xf32>
    %304 = math.tanh %303 : vector<1x32xf32>
    %c0_148 = arith.constant 0 : index
    %c0_149 = arith.constant 0 : index
    %c0_150 = arith.constant 0 : index
    %305 = vector.load %arg23[%c0_148, %c0_149, %c0_150] : memref<1x1x32xf32, #tpu.memory_space<vmem>>, vector<1x1x32xf32>
    %306 = vector.shape_cast %305 : vector<1x1x32xf32> to vector<1x32xf32>
    %307 = vector.shape_cast %304 : vector<1x32xf32> to vector<1x1x32xf32>
    tpu.vector_store %arg23[%c0_148, %c0_149, %c0_150], %307 {strides = array<i32>} : memref<1x1x32xf32, #tpu.memory_space<vmem>>, vector<1x1x32xf32>,
    return
  }
  func.func @transform_0(%arg0: i32) -> (i32, i32, i32) {
    %c0_i32 = arith.constant 0 : i32
    %c0_i32_0 = arith.constant 0 : i32
    %c0_i32_1 = arith.constant 0 : i32
    return %arg0, %c0_i32, %c0_i32_0 : i32, i32, i32
  }
  func.func @transform_1(%arg0: i32) -> (i32, i32, i32) {
    %c0_i32 = arith.constant 0 : i32
    %c0_i32_0 = arith.constant 0 : i32
    %c0_i32_1 = arith.constant 0 : i32
    return %arg0, %c0_i32, %c0_i32_0 : i32, i32, i32
  }
  func.func @transform_2(%arg0: i32) -> (i32, i32) {
    %c0_i32 = arith.constant 0 : i32
    %c0_i32_0 = arith.constant 0 : i32
    %c0_i32_1 = arith.constant 0 : i32
    return %c0_i32, %c0_i32_0 : i32, i32
  }
  func.func @transform_3(%arg0: i32) -> (i32, i32) {
    %c0_i32 = arith.constant 0 : i32
    %c0_i32_0 = arith.constant 0 : i32
    %c0_i32_1 = arith.constant 0 : i32
    return %c0_i32, %c0_i32_0 : i32, i32
  }
  func.func @transform_4(%arg0: i32) -> (i32, i32) {
    %c0_i32 = arith.constant 0 : i32
    %c0_i32_0 = arith.constant 0 : i32
    %c0_i32_1 = arith.constant 0 : i32
    return %c0_i32, %c0_i32_0 : i32, i32
  }
  func.func @transform_5(%arg0: i32) -> (i32, i32) {
    %c0_i32 = arith.constant 0 : i32
    %c0_i32_0 = arith.constant 0 : i32
    %c0_i32_1 = arith.constant 0 : i32
    return %c0_i32, %c0_i32_0 : i32, i32
  }
  func.func @transform_6(%arg0: i32) -> (i32, i32) {
    %c0_i32 = arith.constant 0 : i32
    %c0_i32_0 = arith.constant 0 : i32
    %c0_i32_1 = arith.constant 0 : i32
    return %c0_i32, %c0_i32_0 : i32, i32
  }
  func.func @transform_7(%arg0: i32) -> (i32, i32, i32) {
    %c0_i32 = arith.constant 0 : i32
    %c0_i32_0 = arith.constant 0 : i32
    %c0_i32_1 = arith.constant 0 : i32
    %c0_i32_2 = arith.constant 0 : i32
    return %c0_i32, %c0_i32_0, %c0_i32_1 : i32, i32, i32
  }
  func.func @transform_8(%arg0: i32) -> (i32, i32, i32) {
    %c0_i32 = arith.constant 0 : i32
    %c0_i32_0 = arith.constant 0 : i32
    %c0_i32_1 = arith.constant 0 : i32
    %c0_i32_2 = arith.constant 0 : i32
    return %c0_i32, %c0_i32_0, %c0_i32_1 : i32, i32, i32
  }
  func.func @transform_9(%arg0: i32) -> (i32, i32, i32) {
    %c0_i32 = arith.constant 0 : i32
    %c0_i32_0 = arith.constant 0 : i32
    %c0_i32_1 = arith.constant 0 : i32
    %c0_i32_2 = arith.constant 0 : i32
    return %c0_i32, %c0_i32_0, %c0_i32_1 : i32, i32, i32
  }
  func.func @transform_10(%arg0: i32) -> (i32, i32, i32) {
    %c0_i32 = arith.constant 0 : i32
    %c0_i32_0 = arith.constant 0 : i32
    %c0_i32_1 = arith.constant 0 : i32
    %c0_i32_2 = arith.constant 0 : i32
    return %c0_i32, %c0_i32_0, %c0_i32_1 : i32, i32, i32
  }
  func.func @transform_11(%arg0: i32) -> (i32, i32, i32) {
    %c0_i32 = arith.constant 0 : i32
    %c0_i32_0 = arith.constant 0 : i32
    %c0_i32_1 = arith.constant 0 : i32
    %c0_i32_2 = arith.constant 0 : i32
    return %c0_i32, %c0_i32_0, %c0_i32_1 : i32, i32, i32
  }
  func.func @transform_12(%arg0: i32) -> (i32, i32, i32) {
    %c0_i32 = arith.constant 0 : i32
    %c0_i32_0 = arith.constant 0 : i32
    %c0_i32_1 = arith.constant 0 : i32
    %c0_i32_2 = arith.constant 0 : i32
    return %c0_i32, %c0_i32_0, %c0_i32_1 : i32, i32, i32
  }
  func.func @transform_13(%arg0: i32) -> (i32, i32, i32) {
    %c0_i32 = arith.constant 0 : i32
    %c0_i32_0 = arith.constant 0 : i32
    %c0_i32_1 = arith.constant 0 : i32
    %c0_i32_2 = arith.constant 0 : i32
    return %c0_i32, %c0_i32_0, %c0_i32_1 : i32, i32, i32
  }
  func.func @transform_14(%arg0: i32) -> (i32, i32, i32) {
    %c0_i32 = arith.constant 0 : i32
    %c0_i32_0 = arith.constant 0 : i32
    %c0_i32_1 = arith.constant 0 : i32
    %c0_i32_2 = arith.constant 0 : i32
    return %c0_i32, %c0_i32_0, %c0_i32_1 : i32, i32, i32
  }
  func.func @transform_15(%arg0: i32) -> (i32, i32, i32) {
    %c0_i32 = arith.constant 0 : i32
    %c0_i32_0 = arith.constant 0 : i32
    %c0_i32_1 = arith.constant 0 : i32
    %c0_i32_2 = arith.constant 0 : i32
    return %c0_i32, %c0_i32_0, %c0_i32_1 : i32, i32, i32
  }
  func.func @transform_16(%arg0: i32) -> (i32, i32, i32) {
    %c0_i32 = arith.constant 0 : i32
    %c0_i32_0 = arith.constant 0 : i32
    %c0_i32_1 = arith.constant 0 : i32
    %c0_i32_2 = arith.constant 0 : i32
    return %c0_i32, %c0_i32_0, %c0_i32_1 : i32, i32, i32
  }
  func.func @transform_17(%arg0: i32) -> (i32, i32, i32) {
    %c0_i32 = arith.constant 0 : i32
    %c0_i32_0 = arith.constant 0 : i32
    %c0_i32_1 = arith.constant 0 : i32
    %c0_i32_2 = arith.constant 0 : i32
    return %c0_i32, %c0_i32_0, %c0_i32_1 : i32, i32, i32
  }
  func.func @transform_18(%arg0: i32) -> (i32, i32, i32) {
    %c0_i32 = arith.constant 0 : i32
    %c0_i32_0 = arith.constant 0 : i32
    %c0_i32_1 = arith.constant 0 : i32
    %c0_i32_2 = arith.constant 0 : i32
    return %c0_i32, %c0_i32_0, %c0_i32_1 : i32, i32, i32
  }
  func.func @transform_19(%arg0: i32) -> (i32, i32) {
    %c0_i32 = arith.constant 0 : i32
    %c0_i32_0 = arith.constant 0 : i32
    %c0_i32_1 = arith.constant 0 : i32
    return %c0_i32, %c0_i32_0 : i32, i32
  }
  func.func @transform_20(%arg0: i32) -> (i32, i32) {
    %c0_i32 = arith.constant 0 : i32
    %c0_i32_0 = arith.constant 0 : i32
    %c0_i32_1 = arith.constant 0 : i32
    return %c0_i32, %c0_i32_0 : i32, i32
  }
  func.func @transform_21(%arg0: i32) -> (i32, i32, i32) {
    %c0_i32 = arith.constant 0 : i32
    %c0_i32_0 = arith.constant 0 : i32
    %c0_i32_1 = arith.constant 0 : i32
    return %arg0, %c0_i32, %c0_i32_0 : i32, i32, i32
  }
  func.func @transform_22(%arg0: i32) -> (i32, i32, i32) {
    %c0_i32 = arith.constant 0 : i32
    %c0_i32_0 = arith.constant 0 : i32
    %c0_i32_1 = arith.constant 0 : i32
    return %arg0, %c0_i32, %c0_i32_0 : i32, i32, i32
  }
}

</mosaic_0001>

<bundles_post_ra>
// kernel: forward.1
= control target key start
LH: loop header
LB: loop body
LE: loop exit
PB: predicated region body
PF: predicated region fallthrough
CT: control target
= control target key end

     0   :  { %s5492_s0 = inlined_call_operand.vmem [shape: s32[2,8,1], index: 0, kind: input, shape index: {}]   ;;  %s5493_s1 = inlined_call_operand.vmem [shape: f32[2,1,8], index: 1, kind: input, shape index: {}]   ;;  %s5494_s2 = inlined_call_operand.vmem [shape: bf16[128,32], index: 2, kind: input, shape index: {}]   ;;  %s5495_s3 = inlined_call_operand.vmem [shape: bf16[16,32], index: 3, kind: input, shape index: {}]   ;;  %s5496_s4 = inlined_call_operand.vmem [shape: bf16[2,32], index: 4, kind: input, shape index: {}]   ;;  %s5497_s5 = inlined_call_operand.vmem [shape: f32[1,32], index: 5, kind: input, shape index: {}]   ;;  %s5498_s6 = inlined_call_operand.vmem [shape: f32[1,32], index: 6, kind: input, shape index: {}]   ;;  %s5499_s7 = inlined_call_operand.vmem [shape: bf16[2,32,96], index: 7, kind: input, shape index: {}]   ;;  %s5500_s8 = inlined_call_operand.vmem [shape: f32[2,1,96], index: 8, kind: input, shape index: {}]   ;;  %s5501_s9 = inlined_call_operand.vmem [shape: bf16[2,32,32], index: 9, kind: input, shape index: {}]   ;;  %s5502_s10 = inlined_call_operand.vmem [shape: f32[2,1,32], index: 10, kind: input, shape index: {}]   ;;  %s5503_s11 = inlined_call_operand.vmem [shape: f32[2,1,32], index: 11, kind: input, shape index: {}]   ;;  %s5504_s12 = inlined_call_operand.vmem [shape: f32[2,1,32], index: 12, kind: input, shape index: {}]   ;;  %s5505_s13 = inlined_call_operand.vmem [shape: bf16[2,32,64], index: 13, kind: input, shape index: {}]   ;;  %s5506_s14 = inlined_call_operand.vmem [shape: f32[2,1,64], index: 14, kind: input, shape index: {}]   ;;  %s5507_s15 = inlined_call_operand.vmem [shape: bf16[2,64,32], index: 15, kind: input, shape index: {}]   ;;  %s5508_s16 = inlined_call_operand.vmem [shape: f32[2,1,32], index: 16, kind: input, shape index: {}]   ;;  %s5509_s17 = inlined_call_operand.vmem [shape: f32[2,1,32], index: 17, kind: input, shape index: {}]   ;;  %s5510_s18 = inlined_call_operand.vmem [shape: f32[2,1,32], index: 18, kind: input, shape index: {}]   ;;  %s5511_s19 = inlined_call_operand.vmem [shape: bf16[32,32], index: 19, kind: input, shape index: {}]   ;;  %s5512_s20 = inlined_call_operand.vmem [shape: f32[1,32], index: 20, kind: input, shape index: {}]   ;;  %s5513_s21 = inlined_call_operand.hbm [shape: f32[2,8,32], index: 21, kind: output, shape index: {0}]   ;;  %s5514_s22 = inlined_call_operand.hbm [shape: f32[2,1,32], index: 22, kind: output, shape index: {1}]  }
   0x1   :  { %5529 = sst [smem:[#allocation13_spill]] %s5492_s0 }
   0x2   :  { %5530 = sst [smem:[#allocation14_spill]] %s5493_s1 }
   0x3   :  { %5531 = sst [smem:[#allocation15_spill]] %s5494_s2 }
   0x4   :  { %5532 = sst [smem:[#allocation16_spill]] %s5495_s3 }
   0x5   :  { %5533 = sst [smem:[#allocation17_spill]] %s5496_s4 }
   0x6   :  { %5534 = sst [smem:[#allocation18_spill]] %s5497_s5 }
   0x7   :  { %5535 = sst [smem:[#allocation19_spill]] %s5498_s6 }
   0x8   :  { %5536 = sst [smem:[#allocation20_spill]] %s5499_s7 }
   0x9   :  { %28 = vsyncpa [#allocation3], 0 }
   0xa   :  { %30 = vsyncpa [#allocation3 + $0x1], 0 }
   0xb   :  { %31 = vsyncpa [#allocation5], 0 }
   0xc   :  { %33 = vsyncpa [#allocation5 + $0x1], 0  ;;  %s4703_s3 = smov 0   ;;  %s4705_s28 = smov 0  }
   0xd   :  { %s4707_s29 = smov 0   ;;  %s4709_s30 = smov 0  }
   0xe LB: > { %5537 = sst [smem:[#allocation8_spill]] %s4557_s3  ;;  %s4724_s4 = sadd.s32 4294967295, %s4569_s30   ;;  %s4569_s30 = sphi %s4709_s30, %s5559_s30   ;;  %s4565_s29 = sphi %s4707_s29, %s5561_s29   ;;  %s4561_s28 = sphi %s4705_s28, %s5563_s28   ;;  %s4557_s3 = sphi %s4703_s3, %s5562_s3  }
   0xf   : > { %5538 = sst [smem:[#allocation9_spill]] %s4565_s29  ;;  %s3950_s0 = sadd.s32 4294967294, %s4569_s30  }
  0x10   : > { %s4728_s23 = sadd.s32 1, %s4569_s30   ;;  %s497_s1 = sadd.s32 1, %s4565_s29 }
  0x11   : > { %5539 = sst [smem:[#allocation10_spill]] %s4728_s23  ;;  %s494_s5 = ssub.s32 %s4569_s30, %s4728_s23 }
  0x12   : > { %p507_p0 = scmp.ne.s32.totalorder %s4565_s29, %s4561_s28  ;;  %p495_p1 = scmp.eq.s32.totalorder %s494_s5, 0 }
  0x13   : > { %p508_p2 = scmp.eq.s32.totalorder %s4724_s4, 1  ;;  %p513_p3 = scmp.ne.s32.totalorder %s4561_s28, %s4557_s3 }
  0x14   : > { %p514_p4 = scmp.eq.s32.totalorder %s3950_s0, 1  ;;  %p3953_p7 = scmp.ge.s32.totalorder %s4569_s30, 1 }
  0x15   : > { %s4739_s24 = scalar_select %p495_p1, %s4565_s29, %s497_s1  }
  0x16   : > { %p4741_p5 = por %p508_p2, %p507_p0  ;;  %p4745_p6 = por %p514_p4, %p513_p3 }
  0x17   : > { %5540 = sst [smem:[#allocation11_spill]] %s4739_s24  ;;  %p628_p8 = scmp.lt.s32.totalorder %s4569_s30, 3 }
  0x18   : > { %s5542_s25 = scalar_select %p4745_p6, 1, 0 }
  0x19   : > { %p629_p9 = pnand %p3953_p7, %p628_p8 }
  0x1a   : > { %5543 = sst [smem:[#allocation12_spill]] %s5542_s25  ;;  %p696_p10 = scmp.lt.s32.totalorder (!%p629_p9), %s4724_s4, 1  ;;  %v4571_v1 = vmov (!%p629_p9), 0   ;;  %v4572_v2 = vmov (!%p629_p9), 0.0   ;;  %vm4573_vm0 = vmmov (!%p629_p9), 0   ;;  %v705_v11 = vlaneseq (!%p629_p9) }
  0x1b   : > { %632 = sbr.rel (%p629_p9) target bundleno = 6397 (0x18fd), region = 104  ;;  %s5544_s27 = sld [smem:[#allocation15_spill]] (!%p629_p9)  ;;  %4396 = vset.pattern.permute.xlu0 (!%p629_p9), %v4571_v1  ;;  %4141 = vmatprep.subr.bf16.mxu0 (!%p629_p9), %v4572_v2  ;;  %v4574_v14 = vmov (!%p629_p9), 1.0|1.0   ;;  %v4575_v17 = vmov (!%p629_p9), -1e+09  }
  0x1c   : > { %4161 = vmatprep.subr.bf16.mxu1 (!%p629_p9), %v4572_v2  ;;  %s5545_s29 = sld [smem:[#allocation13_spill]] (!%p629_p9)  ;;  %4157 = vmatprep.mubr.msk.bf16.mxu0 (!%p629_p9), %vm4573_vm0, %v4572_v2  ;;  %v706_v12 = vand.u32 (!%p629_p9), 127, %v705_v11  ;;  %v4804_v16 = vshrl.u32 (!%p629_p9), %v705_v11, 7  ;;  %vm829_vm4 = vcmask (!%p629_p9), 261120   ;;  %s5549_s7 = sld [smem:[#allocation20_spill]] (!%p629_p9)  ;;  %vm1437_vm5 = vcmask (!%p629_p9), 64512  }
  0x1d   : > { %4165 = vmatprep.mubr.msk.bf16.mxu1 (!%p629_p9), %vm4573_vm0, %v4572_v2  ;;  %s5550_s25 = sld [smem:[#allocation18_spill]] (!%p629_p9)  ;;  %s5551_s2 = sld [smem:[#allocation19_spill]] (!%p629_p9)  ;;  %v3969_v50 = vld [vmem:[%s5500_s8] ss:$0 sm:$0xff] (!%p629_p9)  ;;  %v4580_v60 = vmov (!%p629_p9), 1983009808  }
  0x1e   : > { %v824_v19 = vsub.s32 (!%p629_p9), 0, %v4804_v16  ;;  %s4577_s24 = smov (!%p629_p9), 112   ;;  %s4578_s3 = smov (!%p629_p9), 104   ;;  %v937_v61 = vunpack.c.l.s4 (!%p629_p9), %v4580_v60  ;;  %v4581_v63 = vmov (!%p629_p9), 1934713408   ;;  %vm1687_vm6 = vcmask (!%p629_p9), 1043456  }
  0x1f   : > { %s5524_s1 = smov (!%p629_p9), 16   ;;  %vm2018_vm7 = vcmask (!%p629_p9), 130048   ;;  %vm2020_vm8 = vcmask (!%p629_p9), 195584   ;;  %vm2235_vm9 = vcmask (!%p629_p9), 523264  }
  0x20   : > { %v938_v62 = vunpack.c.0.s8 (!%p629_p9), %v937_v61 }
  0x21   : > { %v4397_v0 = vld [vmem:[%s5544_s27] sm:$0xff] (!%p629_p9)   ;;  %v4398_v3 = vld [vmem:[%s5544_s27 + $0x8] sm:$0xff] (!%p629_p9)   ;;  %v4399_v4 = vld [vmem:[%s5544_s27 + $0x10] sm:$0xff] (!%p629_p9)  }
  0x22   : > { %s4758_s0 = scalar_select %p696_p10, %s4724_s4, 1  ;;  %4142 = vmatpush3.bf16.msra.mxu0 %v4397_v0  ;;  %v4400_v6 = vld [vmem:[%s5544_s27 + $0x18] sm:$0xff]   ;;  %v4401_v7 = vld [vmem:[%s5544_s27 + $0x20] sm:$0xff]   ;;  %v4402_v8 = vld [vmem:[%s5544_s27 + $0x28] sm:$0xff]   ;;  %v954_v0 = vunpack.c.l.s4 %v4581_v63 }
  0x23   : > { %4143 = vmatprep.subr.bf16.mxu0 %v4572_v2  ;;  %v4403_v9 = vld [vmem:[%s5544_s27 + $0x30] sm:$0xff]   ;;  %v4404_v10 = vld [vmem:[%s5544_s27 + $0x38] sm:$0xff]   ;;  %s5548_s27 = sld [smem:[#allocation16_spill]]  ;;  %v4405_v38 = vld [vmem:[%s5549_s7] sm:$0xff]  }
  0x24   : > { %s3955_s26 = sshll.u32 %s4758_s0, 3  ;;  %4162 = vmatpush3.bf16.msra.mxu1 %v4405_v38  ;;  %v4406_v39 = vld [vmem:[%s5549_s7 + $0x8] sm:$0xff]   ;;  %v3967_v44 = vld [vmem:[%s5550_s25] ss:$0 sm:$0xff]  ;;  %s5522_s25 = smov 24  }
  0x25   : > { %s699_s23 = scalar_lea.vmem %s5545_s29, %s3955_s26  ;;  %s5546_s29 = sld [smem:[#allocation14_spill]]  ;;  %4163 = vmatprep.subr.bf16.mxu1 %v4572_v2  ;;  %v3968_v46 = vld [vmem:[%s5551_s2] ss:$0 sm:$0xff] }
  0x26   : > { %v704_v5 = vld [vmem:[%s699_s23] sm:$0xff]  ;;  %4144 = vmatpush3.bf16.msra.mxu0 %v4398_v3  ;;  %s5547_s26 = sld [smem:[#allocation17_spill]]  ;;  %v4864_v3 = vsub.s32 %v938_v62, %v4804_v16  ;;  %s5552_s2 = smov 96  }
  0x27   : > { %708 = vperm.xlu0 %4396, %v704_v5   ;;  %4145 = vmatprep.subr.bf16.mxu0 %v4572_v2  ;;  %v955_v5 = vunpack.c.0.s8 %v954_v0 }
  0x28   : > { %4164 = vmatpush3.bf16.msra.mxu1 %v4406_v39 }
  0x29   : > { %v730_v22 = vld [vmem:[%s5548_s27] sm:$0xf]  ;;  %4169 = vmatprep.subr.bf16.mxu1 %v4572_v2  ;;  %v4875_v11 = vsub.s32 %v955_v5, %v4804_v16  ;;  %s5523_s27 = smov 8  }
  0x2a   : > { %4146 = vmatpush3.bf16.msra.mxu0 %v4399_v4  ;;  %v731_v24 = vunpack.c.l.bf16 %v730_v22 }
  0x2b   : > { %4147 = vmatprep.subr.bf16.mxu0 %v4572_v2  ;;  %s702_s23 = scalar_lea.vmem %s5546_s29, %s4758_s0  ;;  %s4576_s0 = smov 120  }
  0x2c   : > { %v858_v15 = vld [vmem:[%s702_s23] sm:$0x1]  ;;  %s5527_s29 = smov 96   ;;  %s5525_s23 = smov 64  }
  0x2d   : > { %vm859_vm3 = vcmp.gt.f32.partialorder %v858_v15, 0.5  ;;  %v732_v21 = vld [vmem:[%s5547_s26] sm:$0x1]  ;;  %s5554_s26 = smov 16  }
  0x2e   : > { %4148 = vmatpush3.bf16.msra.mxu0 %v4400_v6  ;;  %v860_v18 = vsel %vm859_vm3, 0.0, %v4575_v17  ;;  %v733_v23 = vunpack.c.l.bf16 %v732_v21 }
  0x2f   : > { %4149 = vmatprep.subr.bf16.mxu0 %v4572_v2  ;;  %v4807_v20 = vrot.slane %v860_v18, %v824_v19 }
  0x30   : > { %v825_v25 = vrot.slane %v733_v23, %v824_v19 }
  0x32   : > { %4150 = vmatpush3.bf16.msra.mxu0 %v4401_v7 }
  0x33   : > { %4151 = vmatprep.subr.bf16.mxu0 %v4572_v2 }
  0x36   : > { %4152 = vmatpush3.bf16.msra.mxu0 %v4402_v8 }
  0x37   : > { %4153 = vmatprep.subr.bf16.mxu0 %v4572_v2 }
  0x3a   : > { %4154 = vmatpush3.bf16.msra.mxu0 %v4403_v9 }
  0x3b   : > { %4155 = vmatprep.subr.bf16.mxu0 %v4572_v2 }
  0x3e   : > { %4156 = vmatpush3.bf16.msra.mxu0 %v4404_v10 }
  0x3f   : > { %4187 = vmatprep.subr.bf16.mxu0 %v4572_v2 }
  0xa6   : > { %v709_v13 = vpop.permute.xlu0 %708 }
  0xa7   : > { %vm710_vm1 = vcmp.eq.s32.totalorder %v706_v12, %v709_v13 }
  0xa8   : > { %vm3965_vm2 = vmpackc.low %vm710_vm1, %vm710_vm1 }
  0xa9   : > { %4158 = vmatmul.mubr.msk.bf16.vlgmr.msra.gmra.mrb[0].mxu0 %vm3965_vm2, %v4574_v14 }
  0xaa   : > { %4189 = vmatprep.mubr.msk.bf16.mxu0 %vm4573_vm0, %v4572_v2 }
 0x17c   : > { %v816_v26 = vpop.f32.mrb[0].mxu0 }
 0x17d   : > { %v817_v27 = vadd.f32 %v816_v26, %v731_v24  ;;  %v4159_v28 = vpop.f32.mrb[1].mxu0 }
 0x17e   : > { %v819_v29 = vpop.f32.mrb[2].mxu0 }
 0x17f   : > { %v4160_v30 = vpop.f32.mrb[3].mxu0  ;;  %v826_v31 = vadd.f32 %v825_v25, %v817_v27 }
 0x181   : > { %v830_v32 = vsel %vm829_vm4, %v826_v31, 0.0 }
 0x182   : > { %831 = vadd.xlane.f32.xlu0 %v830_v32 }
 0x20f   : > { %v832_v33 = vpop.xlane.xlu0 %831 }
 0x210   : > { %v834_v34 = vmul.f32 0.03125, %v832_v33 }
 0x212   : > { %v835_v35 = vsub.f32 %v826_v31, %v834_v34 }
 0x214   : > { %v836_v36 = vmul.f32 %v835_v35, %v835_v35 }
 0x216   : > { %v837_v37 = vsel %vm829_vm4, %v836_v36, 0.0 }
 0x217   : > { %838 = vadd.xlane.f32.xlu1 %v837_v37 }
 0x2a4   : > { %v839_v40 = vpop.xlane.xlu1 %838 }
 0x2a5   : > { %v840_v41 = vmul.f32 0.03125, %v839_v40 }
 0x2a7   : > { %v841_v42 = vadd.f32 1e-12, %v840_v41 }
 0x2a9   : > { %4427 = vrsqrt.f32 %v841_v42 }
 0x2b3   : > { %v4428_v43 = vpop.eup %4427 }
 0x2b4   : > { %v843_v45 = vmul.f32 %v4428_v43, %v835_v35 }
 0x2b6   : > { %v850_v47 = vmul.f32 %v3967_v44, %v843_v45 }
 0x2b8   : > { %v4831_v48 = vadd.f32 %v3968_v46, %v850_v47 }
 0x2ba   : > { %v861_v49 = vpack.c.bf16 %v4831_v48, %v4831_v48 }
 0x2bc   : > { %4166 = vmatmul.mubr.msk.bf16.vlgmr.msra.gmra.mrb[0].mxu1 %vm829_vm4, %v861_v49 }
 0x2bd   : > { %4171 = vmatprep.mubr.msk.bf16.mxu1 %vm4573_vm0, %v4572_v2 }
 0x38f   : > { %v922_v51 = vpop.f32.mrb[0].mxu1 }
 0x390   : > { %v923_v52 = vadd.f32 %v3969_v50, %v922_v51  ;;  %v4167_v53 = vpop.f32.mrb[1].mxu1 }
 0x391   : > { %v925_v54 = vpop.f32.mrb[2].mxu1 }
 0x392   : > { %v4841_v55 = vpack.c.bf16 %v923_v52, %v923_v52  ;;  %v4168_v56 = vpop.f32.mrb[3].mxu1 }
 0x394   : > { %930 = vrot.lane.b32.xlu1 %v4841_v55, %s4576_s0  ;;  %v942_v8 = vrot.slane %v4841_v55, %v4864_v3 }
 0x398   : > { %932 = vrot.lane.b32.xlu1 %v4841_v55, %s4577_s24 }
 0x39c   : > { %934 = vrot.lane.b32.xlu1 %v4841_v55, %s4578_s3 }
 0x3a0   : > { %1097 = vrot.lane.b32.xlu1 %v4841_v55, %s5527_s29 }
 0x406   : > { %v4851_v57 = vpop.permute.xlu1 %930 }
 0x407   : > { %1099 = vrot.lane.b32.xlu1 %v4851_v57, %s5527_s29  ;;  %v976_v7 = vrot.slane %v4851_v57, %v4864_v3 }
 0x40a   : > { %v4855_v58 = vpop.permute.xlu1 %932 }
 0x40b   : > { %1101 = vrot.lane.b32.xlu0 %v4855_v58, %s5527_s29  ;;  %v950_v6 = vrot.slane %v4855_v58, %v4864_v3 }
 0x40d   : > { %v951_v12 = vcombine.low %v942_v8, %v950_v6  ;;  %v952_v13 = vcombine.high %v942_v8, %v950_v6 }
 0x40e   : > { %v4859_v59 = vpop.permute.xlu1 %934 }
 0x40f   : > { %1103 = vrot.lane.b32.xlu1 %v4859_v59, %s5527_s29  ;;  %v984_v4 = vrot.slane %v4859_v59, %v4864_v3  ;;  %v4884_v17 = vrot.slane %v951_v12, %v4875_v11  ;;  %v4887_v19 = vrot.slane %v952_v13, %v4875_v11  ;;  %s5555_s29 = smov 8  }
 0x411   : > { %v985_v9 = vcombine.low %v976_v7, %v984_v4  ;;  %v986_v10 = vcombine.high %v976_v7, %v984_v4  ;;  %v967_v22 = vcombine.high %v4884_v17, %v4571_v1  ;;  %v968_v25 = vcombine.high %v4887_v19, %v4571_v1 }
 0x412   : > { %v1098_v18 = vpop.permute.xlu1 %1097  ;;  %v1007_v38 = vshrl.u32 %v4884_v17, 16  ;;  %v1023_v44 = vshrl.u32 %v4887_v19, 16 }
 0x413   : > { %v4878_v14 = vrot.slane %v985_v9, %v4875_v11  ;;  %v4881_v15 = vrot.slane %v986_v10, %v4875_v11  ;;  %v1112_v26 = vrot.slane %v1098_v18, %v4864_v3  ;;  %v1015_v32 = vshrl.u32 %v967_v22, 16 }
 0x414   : > { %v1031_v34 = vshrl.u32 %v968_v25, 16 }
 0x415   : > { %v1001_v21 = vcombine.high %v4878_v14, %v4571_v1  ;;  %v1002_v16 = vcombine.high %v4881_v15, %v4571_v1  ;;  %v1008_v35 = vshrl.u32 %v4878_v14, 16  ;;  %v1024_v41 = vshrl.u32 %v4881_v15, 16 }
 0x416   : > { %v1005_v47 = vpack.i.b16 %v4878_v14, %v4884_v17  ;;  %v1021_v50 = vpack.i.b16 %v4881_v15, %v4887_v19 }
 0x417   : > { %v1016_v28 = vshrl.u32 %v1001_v21, 16  ;;  %v1032_v29 = vshrl.u32 %v1002_v16, 16  ;;  %v1009_v49 = vpack.i.b16 %v1008_v35, %v1007_v38  ;;  %v1013_v52 = vpack.i.b16 %v1001_v21, %v967_v22 }
 0x418   : > { %v1029_v53 = vpack.i.b16 %v1002_v16, %v968_v25  ;;  %v1025_v60 = vpack.i.b16 %v1024_v41, %v1023_v44 }
 0x419   : > { %v1017_v40 = vpack.i.b16 %v1016_v28, %v1015_v32  ;;  %v1033_v42 = vpack.i.b16 %v1032_v29, %v1031_v34 }
 0x41a   : > { %v1043_v16 = vcombine.low %v1013_v52, %v1029_v53 }
 0x41b   : > { %v1068_v61 = vcombine.low %v1017_v40, %v1033_v42 }
 0x41c   : > { %v1050_v32 = vrot.slane %v1043_v16, %v4864_v3 }
 0x479   : > { %v1100_v23 = vpop.permute.xlu1 %1099 }
 0x47a   : > { %v1146_v39 = vrot.slane %v1100_v23, %v4864_v3 }
 0x47d   : > { %v1102_v24 = vpop.permute.xlu0 %1101 }
 0x47e   : > { %v1120_v27 = vrot.slane %v1102_v24, %v4864_v3  ;;  %v1060_v24 = vcombine.low %v1009_v49, %v1025_v60 }
 0x480   : > { %v1121_v30 = vcombine.low %v1112_v26, %v1120_v27  ;;  %v1122_v31 = vcombine.high %v1112_v26, %v1120_v27  ;;  %v1035_v27 = vcombine.low %v1005_v47, %v1021_v50  ;;  %v1067_v34 = vrot.slane %v1060_v24, %v4864_v3 }
 0x481   : > { %v1104_v33 = vpop.permute.xlu1 %1103 }
 0x482   : > { %v1129_v36 = vrot.slane %v1121_v30, %v4875_v11  ;;  %v1154_v37 = vrot.slane %v1104_v33, %v4864_v3  ;;  %v1136_v43 = vrot.slane %v1122_v31, %v4875_v11  ;;  %v1075_v30 = vrot.slane %v1068_v61, %v4864_v3 }
 0x484   : > { %v1155_v45 = vcombine.low %v1146_v39, %v1154_v37  ;;  %v1156_v46 = vcombine.high %v1146_v39, %v1154_v37  ;;  %v1137_v51 = vcombine.high %v1129_v36, %v4571_v1  ;;  %v1138_v62 = vcombine.high %v1136_v43, %v4571_v1 }
 0x485   : > { %v1177_v63 = vshrl.u32 %v1129_v36, 16  ;;  %v1193_v8 = vshrl.u32 %v1136_v43, 16  ;;  %v1042_v37 = vrot.slane %v1035_v27, %v4864_v3  ;;  %v1076_v40 = vcombine.low %v1067_v34, %v1075_v30 }
 0x486   : > { %v1163_v54 = vrot.slane %v1155_v45, %v4875_v11  ;;  %v1170_v56 = vrot.slane %v1156_v46, %v4875_v11  ;;  %v1185_v7 = vshrl.u32 %v1137_v51, 16  ;;  %v1201_v17 = vshrl.u32 %v1138_v62, 16 }
 0x487   : > { %v1051_v41 = vcombine.low %v1042_v37, %v1050_v32  ;;  %v1083_v46 = vrot.slane %v1076_v40, %v4875_v11 }
 0x488   : > { %v1171_v0 = vcombine.high %v1163_v54, %v4571_v1  ;;  %v1172_v4 = vcombine.high %v1170_v56, %v4571_v1  ;;  %v1175_v5 = vpack.i.b16 %v1163_v54, %v1129_v36  ;;  %v1178_v6 = vshrl.u32 %v1163_v54, 16 }
 0x489   : > { %v1191_v9 = vpack.i.b16 %v1170_v56, %v1136_v43  ;;  %v1194_v10 = vshrl.u32 %v1170_v56, 16  ;;  %v1058_v47 = vrot.slane %v1051_v41, %v4875_v11  ;;  %v1084_v56 = vcombine.high %v1083_v46, %v4571_v1 }
 0x48a   : > { %v1179_v12 = vpack.i.b16 %v1178_v6, %v1177_v63  ;;  %v1183_v13 = vpack.i.b16 %v1171_v0, %v1137_v51  ;;  %v1186_v14 = vshrl.u32 %v1171_v0, 16  ;;  %v1199_v15 = vpack.i.b16 %v1172_v4, %v1138_v62 }
 0x48b   : > { %v1195_v18 = vpack.i.b16 %v1194_v10, %v1193_v8  ;;  %v1202_v19 = vshrl.u32 %v1172_v4, 16  ;;  %v1205_v21 = vcombine.low %v1175_v5, %v1191_v9  ;;  %v1059_v62 = vcombine.high %v1058_v47, %v4571_v1 }
 0x48c   : > { %v1187_v22 = vpack.i.b16 %v1186_v14, %v1185_v7  ;;  %v1213_v23 = vcombine.low %v1183_v13, %v1199_v15  ;;  %v1087_v63 = vpack.i.b16 %v1083_v46, %v1058_v47  ;;  %v1095_v0 = vshrl.u32 %v1084_v56, 16 }
 0x48d   : > { %v1203_v25 = vpack.i.b16 %v1202_v19, %v1201_v17  ;;  %v1230_v26 = vcombine.low %v1179_v12, %v1195_v18  ;;  %v1212_v28 = vrot.slane %v1205_v21, %v4864_v3  ;;  %v1094_v5 = vshrl.u32 %v1059_v62, 16 }
 0x48e   : > { %v1220_v29 = vrot.slane %v1213_v23, %v4864_v3  ;;  %v1089_v7 = vshrl.u32 %v1083_v46, 16  ;;  %v1088_v8 = vshrl.u32 %v1058_v47, 16  ;;  %v1093_v13 = vpack.i.b16 %v1084_v56, %v1059_v62 }
 0x48f   : > { %v1238_v31 = vcombine.low %v1187_v22, %v1203_v25  ;;  %v1237_v35 = vrot.slane %v1230_v26, %v4864_v3  ;;  %v1096_v6 = vpack.i.b16 %v1095_v0, %v1094_v5 }
 0x490   : > { %v1221_v33 = vcombine.low %v1212_v28, %v1220_v29  ;;  %v1090_v10 = vpack.i.b16 %v1089_v7, %v1088_v8 }
 0x491   : > { %v1245_v36 = vrot.slane %v1238_v31, %v4864_v3 }
 0x492   : > { %v1228_v38 = vrot.slane %v1221_v33, %v4875_v11 }
 0x493   : > { %v1246_v39 = vcombine.low %v1237_v35, %v1245_v36 }
 0x494   : > { %v1229_v43 = vcombine.high %v1228_v38, %v4571_v1  ;;  %v1258_v54 = vshrl.u32 %v1228_v38, 16 }
 0x495   : > { %v1253_v42 = vrot.slane %v1246_v39, %v4875_v11 }
 0x496   : > { %v1264_v50 = vshrl.u32 %v1229_v43, 16 }
 0x497   : > { %v1257_v44 = vpack.i.b16 %v1253_v42, %v1228_v38  ;;  %v1254_v45 = vcombine.high %v1253_v42, %v4571_v1  ;;  %v1259_v52 = vshrl.u32 %v1253_v42, 16 }
 0x499   : > { %v1442_v49 = vsel %vm1437_vm5, %v1257_v44, 0  ;;  %v1265_v51 = vshrl.u32 %v1254_v45, 16  ;;  %v1260_v61 = vpack.i.b16 %v1259_v52, %v1258_v54  ;;  %v1263_v9 = vpack.i.b16 %v1254_v45, %v1229_v43 }
 0x49a   : > { %4170 = vmatpush3.bf16.xpose.msra.mxu1 %v1442_v49 }
 0x49b   : > { %v1266_v53 = vpack.i.b16 %v1265_v51, %v1264_v50  ;;  %4175 = vmatprep.subr.bf16.mxu1 %v4572_v2  ;;  %v1488_v4 = vsel %vm1437_vm5, %v1260_v61, 0  ;;  %v1534_v12 = vsel %vm1437_vm5, %v1263_v9, 0 }
 0x49d   : > { %v1580_v60 = vsel %vm1437_vm5, %v1266_v53, 0 }
 0x49e   : > { %4188 = vmatpush3.bf16.xpose.msra.mxu0 %v1580_v60 }
 0x49f   : > { %4199 = vmatprep.subr.bf16.mxu0 %v4572_v2 }
 0x4a1   : > { %4172 = vmatmul.mubr.msk.bf16.vlgmr.msra.gmra.mrb[4].mxu1 %vm1437_vm5, %v1087_v63 }
 0x4a2   : > { %4176 = vmatpush3.bf16.xpose.msra.mxu1 %v1488_v4  ;;  %4177 = vmatprep.mubr.msk.bf16.mxu1 %vm4573_vm0, %v4572_v2 }
 0x4a3   : > { %4181 = vmatprep.subr.bf16.mxu1 %v4572_v2 }
 0x4a5   : > { %4190 = vmatmul.mubr.msk.bf16.vlgmr.msra.gmra.mrb[4].mxu0 %vm1437_vm5, %v1096_v6 }
 0x4a6   : > { %4201 = vmatprep.mubr.msk.bf16.mxu0 %vm4573_vm0, %v4572_v2 }
 0x4a9   : > { %4178 = vmatmul.mubr.msk.bf16.vlgmr.msra.gmra.mrb[8].mxu1 %vm1437_vm5, %v1090_v10 }
 0x4aa   : > { %4182 = vmatpush3.bf16.xpose.msra.mxu1 %v1534_v12  ;;  %4183 = vmatprep.mubr.msk.bf16.mxu1 %vm4573_vm0, %v4572_v2 }
 0x4ab   : > { %4193 = vmatprep.subr.bf16.mxu1 %v4572_v2 }
 0x4b1   : > { %4184 = vmatmul.mubr.msk.bf16.vlgmr.msra.gmra.mrb[12].mxu1 %vm1437_vm5, %v1093_v13 }
 0x4b2   : > { %4195 = vmatprep.mubr.msk.bf16.mxu1 %vm4573_vm0, %v4572_v2 }
 0x574   : > { %v1478_v14 = vpop.f32.mrb[4].mxu1 }
 0x575   : > { %v1622_v15 = vmul.f32 0.35355338, %v1478_v14  ;;  %v4173_v17 = vpop.f32.mrb[5].mxu1 }
 0x576   : > { %v1481_v18 = vpop.f32.mrb[6].mxu1 }
 0x577   : > { %v4174_v19 = vpop.f32.mrb[7].mxu1  ;;  %v1632_v21 = vadd.f32 %v4807_v20, %v1622_v15 }
 0x578   : > { %v1616_v16 = vpop.f32.mrb[4].mxu0 }
 0x579   : > { %v1625_v22 = vmul.f32 0.35355338, %v1616_v16  ;;  %v4191_v23 = vpop.f32.mrb[5].mxu0  ;;  %v1636_v24 = vsel %vm1437_vm5, %v1632_v21, -inf }
 0x57a   : > { %1637 = vmax.xlane.f32.xlu1 %v1636_v24  ;;  %v1619_v25 = vpop.f32.mrb[6].mxu0 }
 0x57b   : > { %v4192_v26 = vpop.f32.mrb[7].mxu0  ;;  %v1635_v27 = vadd.f32 %v4807_v20, %v1625_v22 }
 0x57c   : > { %v1524_v28 = vpop.f32.mrb[8].mxu1 }
 0x57d   : > { %v1623_v29 = vmul.f32 0.35355338, %v1524_v28  ;;  %v4179_v30 = vpop.f32.mrb[9].mxu1  ;;  %v1645_v31 = vsel %vm1437_vm5, %v1635_v27, -inf }
 0x57e   : > { %v1527_v32 = vpop.f32.mrb[10].mxu1  ;;  %1646 = vmax.xlane.f32.xlu1 %v1645_v31 }
 0x57f   : > { %v4180_v33 = vpop.f32.mrb[11].mxu1  ;;  %v1633_v34 = vadd.f32 %v4807_v20, %v1623_v29 }
 0x581   : > { %v1639_v35 = vsel %vm1437_vm5, %v1633_v34, -inf }
 0x582   : > { %1640 = vmax.xlane.f32.xlu0 %v1639_v35 }
 0x584   : > { %v1570_v36 = vpop.f32.mrb[12].mxu1 }
 0x585   : > { %v1624_v37 = vmul.f32 0.35355338, %v1570_v36  ;;  %v4185_v38 = vpop.f32.mrb[13].mxu1 }
 0x586   : > { %v1573_v39 = vpop.f32.mrb[14].mxu1 }
 0x587   : > { %v4186_v40 = vpop.f32.mrb[15].mxu1  ;;  %v1634_v41 = vadd.f32 %v4807_v20, %v1624_v37 }
 0x589   : > { %v1642_v42 = vsel %vm1437_vm5, %v1634_v41, -inf }
 0x58a   : > { %1643 = vmax.xlane.f32.xlu1 %v1642_v42 }
 0x59b   : > { %1267 = vrot.lane.b32.xlu1 %v4841_v55, %s5525_s23 }
 0x607   : > { %v1638_v43 = vpop.xlane.xlu1 %1637 }
 0x608   : > { %v1648_v44 = vsub.f32 %v1632_v21, %v1638_v43 }
 0x60a   : > { %v1652_v45 = vmul.f32 1.442695, %v1648_v44 }
 0x60b   : > { %v1647_v55 = vpop.xlane.xlu1 %1646 }
 0x60c   : > { %4429 = vpow2.f32 %v1652_v45  ;;  %v1651_v54 = vsub.f32 %v1635_v27, %v1647_v55 }
 0x60e   : > { %v1658_v60 = vmul.f32 1.442695, %v1651_v54 }
 0x60f   : > { %v1641_v46 = vpop.xlane.xlu0 %1640 }
 0x610   : > { %v1649_v47 = vsub.f32 %v1633_v34, %v1641_v46 }
 0x612   : > { %v1654_v49 = vmul.f32 1.442695, %v1649_v47 }
 0x614   : > { %4431 = vpow2.f32 %v1654_v49 }
 0x615   : > { %4433 = vpow2.f32 %v1658_v60 }
 0x616   : > { %v4963_v50 = vpop.eup %4429 }
 0x617   : > { %v1660_v51 = vsel %vm1437_vm5, %v4963_v50, 0.0  ;;  %v1644_v56 = vpop.xlane.xlu1 %1643 }
 0x618   : > { %1661 = vadd.xlane.f32.xlu1 %v1660_v51  ;;  %v1650_v61 = vsub.f32 %v1634_v41, %v1644_v56 }
 0x61a   : > { %v1656_v62 = vmul.f32 1.442695, %v1650_v61 }
 0x61c   : > { %4435 = vpow2.f32 %v1656_v62 }
 0x61e   : > { %v4967_v52 = vpop.eup %4431 }
 0x61f   : > { %v1663_v53 = vsel %vm1437_vm5, %v4967_v52, 0.0  ;;  %v4977_v63 = vpop.eup %4433 }
 0x620   : > { %1664 = vadd.xlane.f32.xlu0 %v1663_v53  ;;  %v1669_v0 = vsel %vm1437_vm5, %v4977_v63, 0.0 }
 0x629   : > { %1271 = vrot.lane.b32.xlu1 %v4855_v58, %s5525_s23  ;;  %v4981_v58 = vpop.eup %4435 }
 0x62d   : > { %1273 = vrot.lane.b32.xlu1 %v4859_v59, %s5525_s23  ;;  %v1666_v59 = vsel %vm1437_vm5, %v4981_v58, 0.0 }
 0x636   : > { %1269 = vrot.lane.b32.xlu0 %v4851_v57, %s5525_s23  ;;  %v1268_v57 = vpop.permute.xlu1 %1267  ;;  %s5556_s23 = smov 24  }
 0x637   : > { %v1282_v7 = vrot.slane %v1268_v57, %v4864_v3 }
 0x651   : > { %1670 = vadd.xlane.f32.xlu1 %v1669_v0 }
 0x655   : > { %1667 = vadd.xlane.f32.xlu0 %v1666_v59 }
 0x6a5   : > { %v1662_v4 = vpop.xlane.xlu1 %1661 }
 0x6a6   : > { %4437 = vrcp.f32 %v1662_v4 }
 0x6a9   : > { %v1272_v5 = vpop.permute.xlu1 %1271 }
 0x6aa   : > { %v1290_v6 = vrot.slane %v1272_v5, %v4864_v3 }
 0x6ac   : > { %v1291_v8 = vcombine.low %v1282_v7, %v1290_v6  ;;  %v1292_v10 = vcombine.high %v1282_v7, %v1290_v6 }
 0x6ad   : > { %v1665_v9 = vpop.xlane.xlu0 %1664  ;;  %v1274_v12 = vpop.permute.xlu1 %1273 }
 0x6ae   : > { %v1299_v13 = vrot.slane %v1291_v8, %v4875_v11  ;;  %v1324_v15 = vrot.slane %v1274_v12, %v4864_v3  ;;  %v1306_v18 = vrot.slane %v1292_v10, %v4875_v11  ;;  %4439 = vrcp.f32 %v1665_v9 }
 0x6b0   : > { %v1307_v16 = vcombine.high %v1299_v13, %v4571_v1  ;;  %v1308_v24 = vcombine.high %v1306_v18, %v4571_v1  ;;  %v1347_v25 = vshrl.u32 %v1299_v13, 16  ;;  %v1363_v31 = vshrl.u32 %v1306_v18, 16  ;;  %v4438_v51 = vpop.eup %4437 }
 0x6b1   : > { %v1270_v14 = vpop.permute.xlu0 %1269  ;;  %v1676_v59 = vmul.f32 %v4438_v51, %v4963_v50 }
 0x6b2   : > { %v1316_v17 = vrot.slane %v1270_v14, %v4864_v3  ;;  %v1355_v30 = vshrl.u32 %v1307_v16, 16  ;;  %v1371_v38 = vshrl.u32 %v1308_v24, 16 }
 0x6b4   : > { %v1325_v19 = vcombine.low %v1316_v17, %v1324_v15  ;;  %v1326_v21 = vcombine.high %v1316_v17, %v1324_v15  ;;  %v1680_v15 = vpack.c.bf16 %v1676_v59, %v1676_v59 }
 0x6b6   : > { %v1333_v22 = vrot.slane %v1325_v19, %v4875_v11  ;;  %v1340_v23 = vrot.slane %v1326_v21, %v4875_v11 }
 0x6b8   : > { %v1341_v26 = vcombine.high %v1333_v22, %v4571_v1  ;;  %v1342_v27 = vcombine.high %v1340_v23, %v4571_v1  ;;  %v1345_v28 = vpack.i.b16 %v1333_v22, %v1299_v13  ;;  %v1348_v29 = vshrl.u32 %v1333_v22, 16  ;;  %v4440_v55 = vpop.eup %4439 }
 0x6b9   : > { %v1361_v32 = vpack.i.b16 %v1340_v23, %v1306_v18  ;;  %v1364_v33 = vshrl.u32 %v1340_v23, 16  ;;  %v1677_v7 = vmul.f32 %v4440_v55, %v4967_v52 }
 0x6ba   : > { %v1349_v34 = vpack.i.b16 %v1348_v29, %v1347_v25  ;;  %v1353_v35 = vpack.i.b16 %v1341_v26, %v1307_v16  ;;  %v1356_v36 = vshrl.u32 %v1341_v26, 16  ;;  %v1369_v37 = vpack.i.b16 %v1342_v27, %v1308_v24 }
 0x6bb   : > { %v1365_v39 = vpack.i.b16 %v1364_v33, %v1363_v31  ;;  %v1372_v40 = vshrl.u32 %v1342_v27, 16  ;;  %v1375_v41 = vcombine.low %v1345_v28, %v1361_v32  ;;  %v1681_v18 = vpack.c.bf16 %v1677_v7, %v1677_v7 }
 0x6bc   : > { %v1357_v42 = vpack.i.b16 %v1356_v36, %v1355_v30  ;;  %v1383_v43 = vcombine.low %v1353_v35, %v1369_v37 }
 0x6bd   : > { %v1373_v44 = vpack.i.b16 %v1372_v40, %v1371_v38  ;;  %v1400_v45 = vcombine.low %v1349_v34, %v1365_v39  ;;  %v1382_v46 = vrot.slane %v1375_v41, %v4864_v3 }
 0x6be   : > { %v1390_v47 = vrot.slane %v1383_v43, %v4864_v3 }
 0x6bf   : > { %v1408_v49 = vcombine.low %v1357_v42, %v1373_v44  ;;  %v1407_v54 = vrot.slane %v1400_v45, %v4864_v3 }
 0x6c0   : > { %v1391_v53 = vcombine.low %v1382_v46, %v1390_v47 }
 0x6c1   : > { %v1415_v56 = vrot.slane %v1408_v49, %v4864_v3 }
 0x6c2   : > { %v1398_v60 = vrot.slane %v1391_v53, %v4875_v11 }
 0x6c3   : > { %v1416_v61 = vcombine.low %v1407_v54, %v1415_v56  ;;  %v4407_v56 = vld [vmem:[%s5501_s9] sm:$0xff]  }
 0x6c4   : > { %v1399_v62 = vcombine.high %v1398_v60, %v4571_v1  ;;  %v1428_v4 = vshrl.u32 %v1398_v60, 16 }
 0x6c5   : > { %v1423_v0 = vrot.slane %v1416_v61, %v4875_v11 }
 0x6c6   : > { %v1434_v8 = vshrl.u32 %v1399_v62, 16 }
 0x6c7   : > { %v1427_v57 = vpack.i.b16 %v1423_v0, %v1398_v60  ;;  %v1429_v5 = vshrl.u32 %v1423_v0, 16  ;;  %v1424_v6 = vcombine.high %v1423_v0, %v4571_v1 }
 0x6c9   : > { %v1689_v9 = vsel %vm1687_vm6, %v1427_v57, 0  ;;  %v1430_v10 = vpack.i.b16 %v1429_v5, %v1428_v4  ;;  %v1433_v12 = vpack.i.b16 %v1424_v6, %v1399_v62  ;;  %v1435_v13 = vshrl.u32 %v1424_v6, 16  ;;  %v4408_v6 = vld [vmem:[%s5501_s9 + $0x8] sm:$0xff]  }
 0x6ca   : > { %4194 = vmatpush3.bf16.msra.mxu1 %v1689_v9 }
 0x6cb   : > { %v1735_v14 = vsel %vm1687_vm6, %v1430_v10, 0  ;;  %4205 = vmatprep.subr.bf16.mxu1 %v4572_v2  ;;  %v1436_v50 = vpack.i.b16 %v1435_v13, %v1434_v8  ;;  %v1781_v17 = vsel %vm1687_vm6, %v1433_v12, 0 }
 0x6cc   : > { %4200 = vmatpush3.bf16.msra.mxu0 %v1735_v14 }
 0x6cd   : > { %4196 = vmatmul.mubr.msk.bf16.vlgmr.msra.gmra.mrb[16].mxu1 %vm1437_vm5, %v1680_v15  ;;  %4211 = vmatprep.subr.bf16.mxu0 %v4572_v2  ;;  %v1827_v52 = vsel %vm1687_vm6, %v1436_v50, 0 }
 0x6ce   : > { %4206 = vmatpush3.bf16.msra.mxu1 %v1781_v17  ;;  %4207 = vmatprep.mubr.msk.bf16.mxu1 %vm4573_vm0, %v4572_v2 }
 0x6cf   : > { %4202 = vmatmul.mubr.msk.bf16.vlgmr.msra.gmra.mrb[8].mxu0 %vm1437_vm5, %v1681_v18  ;;  %4217 = vmatprep.subr.bf16.mxu1 %v4572_v2 }
 0x6d0   : > { %4212 = vmatpush3.bf16.msra.mxu0 %v1827_v52  ;;  %4213 = vmatprep.mubr.msk.bf16.mxu0 %vm4573_vm0, %v4572_v2 }
 0x6d1   : > { %4225 = vmatprep.subr.bf16.mxu0 %v4572_v2 }
 0x6de   : > { %v1671_v19 = vpop.xlane.xlu1 %1670 }
 0x6df   : > { %4441 = vrcp.f32 %v1671_v19 }
 0x6e2   : > { %v1668_v21 = vpop.xlane.xlu0 %1667 }
 0x6e3   : > { %4443 = vrcp.f32 %v1668_v21 }
 0x6e9   : > { %v4442_v16 = vpop.eup %4441 }
 0x6ea   : > { %v1679_v22 = vmul.f32 %v4442_v16, %v4977_v63 }
 0x6ec   : > { %v1683_v23 = vpack.c.bf16 %v1679_v22, %v1679_v22 }
 0x6ed   : > { %v4444_v24 = vpop.eup %4443 }
 0x6ee   : > { %v1678_v25 = vmul.f32 %v4444_v24, %v4981_v58  ;;  %4214 = vmatmul.mubr.msk.bf16.vlgmr.msra.gmra.mrb[12].mxu0 %vm1437_vm5, %v1683_v23 }
 0x6ef   : > { %4229 = vmatprep.mubr.msk.bf16.mxu0 %vm4573_vm0, %v4572_v2 }
 0x6f0   : > { %v1682_v26 = vpack.c.bf16 %v1678_v25, %v1678_v25 }
 0x6f2   : > { %4208 = vmatmul.mubr.msk.bf16.vlgmr.msra.gmra.mrb[20].mxu1 %vm1437_vm5, %v1682_v26 }
 0x6f3   : > { %4221 = vmatprep.mubr.msk.bf16.mxu1 %vm4573_vm0, %v4572_v2  ;;  %4218 = vmatpush3.bf16.msra.mxu1 %v4407_v56  ;;  %v4412_v56 = vld [vmem:[%s5507_s15 + $0x8] sm:$0xff]  }
 0x6f4   : > { %4219 = vmatprep.subr.bf16.mxu1 %v4572_v2 }
 0x6f7   : > { %4220 = vmatpush3.bf16.msra.mxu1 %v4408_v6 }
 0x6f8   : > { %4233 = vmatprep.subr.bf16.mxu1 %v4572_v2 }
 0x7a0   : > { %v1725_v27 = vpop.f32.mrb[16].mxu1 }
 0x7a1   : > { %v4197_v28 = vpop.f32.mrb[17].mxu1 }
 0x7a2   : > { %v1728_v29 = vpop.f32.mrb[18].mxu1  ;;  %v1771_v30 = vpop.f32.mrb[8].mxu0 }
 0x7a3   : > { %v4198_v63 = vpop.f32.mrb[19].mxu1  ;;  %v4203_v31 = vpop.f32.mrb[9].mxu0 }
 0x7a4   : > { %v1774_v32 = vpop.f32.mrb[10].mxu0 }
 0x7a5   : > { %v4204_v33 = vpop.f32.mrb[11].mxu0 }
 0x7c1   : > { %v1863_v58 = vpop.f32.mrb[12].mxu0 }
 0x7c2   : > { %v1885_v34 = vcombine.low %v1771_v30, %v1863_v58  ;;  %v1886_v35 = vcombine.high %v1771_v30, %v1863_v58  ;;  %v4215_v36 = vpop.f32.mrb[13].mxu0  ;;  %v3983_v30 = vld [vmem:[%s5502_s10] ss:$0 sm:$0xff] }
 0x7c3   : > { %v1866_v37 = vpop.f32.mrb[14].mxu0 }
 0x7c4   : > { %v4216_v38 = vpop.f32.mrb[15].mxu0  ;;  %v1893_v44 = vrot.slane %v1885_v34, %v4864_v3  ;;  %v1900_v45 = vrot.slane %v1886_v35, %v4864_v3 }
 0x7c5   : > { %v1817_v39 = vpop.f32.mrb[20].mxu1 }
 0x7c6   : > { %v1869_v40 = vcombine.low %v1725_v27, %v1817_v39  ;;  %v1870_v41 = vcombine.high %v1725_v27, %v1817_v39  ;;  %v4209_v42 = vpop.f32.mrb[21].mxu1 }
 0x7c7   : > { %v1820_v43 = vpop.f32.mrb[22].mxu1  ;;  %v4410_v42 = vld [vmem:[%s5505_s13 + $0x8] sm:$0xff]  }
 0x7c8   : > { %v1877_v46 = vrot.slane %v1869_v40, %v4864_v3  ;;  %v1884_v47 = vrot.slane %v1870_v41, %v4864_v3  ;;  %v4210_v49 = vpop.f32.mrb[23].mxu1  ;;  %v4409_v41 = vld [vmem:[%s5505_s13] sm:$0xff]  }
 0x7c9   : > { %4226 = vmatpush3.bf16.msra.mxu0 %v4409_v41  ;;  %v3988_v49 = vld [vmem:[%s5504_s12] ss:$0 sm:$0xff] }
 0x7ca   : > { %v1901_v51 = vcombine.low %v1877_v46, %v1893_v44  ;;  %v1902_v53 = vcombine.high %v1877_v46, %v1893_v44  ;;  %v1917_v55 = vcombine.low %v1884_v47, %v1900_v45  ;;  %v1918_v54 = vcombine.high %v1884_v47, %v1900_v45  ;;  %4227 = vmatprep.subr.bf16.mxu0 %v4572_v2  ;;  %v3987_v46 = vld [vmem:[%s5503_s11] ss:$0 sm:$0xff] }
 0x7cc   : > { %v1909_v60 = vrot.slane %v1901_v51, %v4875_v11  ;;  %v1916_v61 = vrot.slane %v1902_v53, %v4875_v11  ;;  %v1925_v62 = vrot.slane %v1917_v55, %v4875_v11  ;;  %v1932_v0 = vrot.slane %v1918_v54, %v4875_v11  ;;  %v4411_v54 = vld [vmem:[%s5507_s15] sm:$0xff]  }
 0x7cd   : > { %4228 = vmatpush3.bf16.msra.mxu0 %v4410_v42 }
 0x7ce   : > { %v1937_v59 = vcombine.low %v1909_v60, %v1916_v61  ;;  %v3981_v57 = vcombine.high %v1909_v60, %v1916_v61  ;;  %v1953_v4 = vcombine.low %v1925_v62, %v1932_v0  ;;  %v3982_v5 = vcombine.high %v1925_v62, %v1932_v0  ;;  %4245 = vmatprep.subr.bf16.mxu0 %v4572_v2  ;;  %v4413_v60 = vld [vmem:[%s5507_s15 + $0x10] sm:$0xff]   ;;  %v4414_v61 = vld [vmem:[%s5507_s15 + $0x18] sm:$0xff]   ;;  %v3989_v62 = vld [vmem:[%s5506_s14] ss:$0 sm:$0xff] }
 0x7d0   : > { %v1944_v7 = vrot.slane %v1937_v59, %v4864_v3  ;;  %v1952_v8 = vrot.slane %v3981_v57, %v4864_v3  ;;  %v1960_v9 = vrot.slane %v1953_v4, %v4864_v3  ;;  %v1968_v10 = vrot.slane %v3982_v5, %v4864_v3 }
 0x7d2   : > { %v1970_v12 = vcombine.high %v1944_v7, %v1952_v8  ;;  %v1986_v13 = vcombine.high %v1960_v9, %v1968_v10  ;;  %v1969_v14 = vcombine.low %v1944_v7, %v1952_v8  ;;  %v1985_v15 = vcombine.low %v1960_v9, %v1968_v10 }
 0x7d4   : > { %v1984_v50 = vrot.slane %v1970_v12, %v4875_v11  ;;  %v2000_v17 = vrot.slane %v1986_v13, %v4875_v11  ;;  %v1977_v18 = vrot.slane %v1969_v14, %v4875_v11  ;;  %v1993_v52 = vrot.slane %v1985_v15, %v4875_v11 }
 0x7d6   : > { %v2003_v19 = vcombine.low %v1984_v50, %v2000_v17  ;;  %v2002_v21 = vcombine.high %v1977_v18, %v1993_v52  ;;  %v2004_v16 = vcombine.high %v1984_v50, %v2000_v17  ;;  %v2001_v22 = vcombine.low %v1977_v18, %v1993_v52  ;;  %v3993_v17 = vld [vmem:[%s5508_s16] ss:$0 sm:$0xff] }
 0x7d8   : > { %2010 = vrot.lane.b32.xlu1 %v2003_v19, %s5524_s1  ;;  %2006 = vrot.lane.b32.xlu0 %v2002_v21, %s5523_s27  ;;  %s4065_s1 = sshll.u32 %s4724_s4, 7 }
 0x7dc   : > { %2014 = vrot.lane.b32.xlu0 %v2004_v16, %s5522_s25 }
 0x84a   : > { %v2007_v23 = vpop.permute.xlu0 %2006  ;;  %v2011_v24 = vpop.permute.xlu1 %2010 }
 0x84b   : > { %v2017_v25 = vsel %vm1437_vm5, %v2001_v22, %v2007_v23 }
 0x84c   : > { %v2019_v27 = vsel %vm2018_vm7, %v2017_v25, %v2011_v24 }
 0x84e   : > { %v2015_v26 = vpop.permute.xlu0 %2014 }
 0x84f   : > { %v2021_v28 = vsel %vm2020_vm8, %v2019_v27, %v2015_v26 }
 0x850   : > { %v2022_v29 = vpack.c.bf16 %v2021_v28, %v2021_v28 }
 0x852   : > { %4222 = vmatmul.mubr.msk.bf16.vlgmr.msra.gmra.mrb[24].mxu1 %vm829_vm4, %v2022_v29  ;;  %v4415_v29 = vld [vmem:[%s5549_s7 + $0x10] sm:$0xff]  }
 0x853   : > { %4241 = vmatprep.mubr.msk.bf16.mxu1 %vm4573_vm0, %v4572_v2  ;;  %4234 = vmatpush3.bf16.msra.mxu1 %v4411_v54 }
 0x854   : > { %4235 = vmatprep.subr.bf16.mxu1 %v4572_v2 }
 0x857   : > { %4236 = vmatpush3.bf16.msra.mxu1 %v4412_v56 }
 0x858   : > { %4237 = vmatprep.subr.bf16.mxu1 %v4572_v2 }
 0x85b   : > { %4238 = vmatpush3.bf16.msra.mxu1 %v4413_v60 }
 0x85c   : > { %4239 = vmatprep.subr.bf16.mxu1 %v4572_v2 }
 0x85f   : > { %4240 = vmatpush3.bf16.msra.mxu1 %v4414_v61 }
 0x860   : > { %4259 = vmatprep.subr.bf16.mxu1 %v4572_v2 }
 0x925   : > { %v2083_v63 = vpop.f32.mrb[24].mxu1 }
 0x926   : > { %v2084_v31 = vadd.f32 %v3983_v30, %v2083_v63  ;;  %v4223_v32 = vpop.f32.mrb[25].mxu1  ;;  %v4416_v30 = vld [vmem:[%s5549_s7 + $0x18] sm:$0xff]  }
 0x927   : > { %v2086_v33 = vpop.f32.mrb[26].mxu1 }
 0x928   : > { %v4224_v58 = vpop.f32.mrb[27].mxu1  ;;  %v2089_v34 = vadd.f32 %v2084_v31, %v4831_v48 }
 0x929   : > { %v3999_v58 = vld [vmem:[%s5509_s17] ss:$0 sm:$0xff] }
 0x92a   : > { %v2092_v35 = vsel %vm829_vm4, %v2089_v34, 0.0 }
 0x92b   : > { %2093 = vadd.xlane.f32.xlu1 %v2092_v35  ;;  %v4000_v35 = vld [vmem:[%s5510_s18] ss:$0 sm:$0xff] }
 0x9b8   : > { %v2094_v36 = vpop.xlane.xlu1 %2093 }
 0x9b9   : > { %v2095_v37 = vmul.f32 0.03125, %v2094_v36 }
 0x9bb   : > { %v2096_v38 = vsub.f32 %v2089_v34, %v2095_v37 }
 0x9bd   : > { %v2097_v39 = vmul.f32 %v2096_v38, %v2096_v38 }
 0x9bf   : > { %v2098_v40 = vsel %vm829_vm4, %v2097_v39, 0.0  ;;  %v4006_v39 = vld [vmem:[%s5500_s8 + $0x1] ss:$0 sm:$0xff] }
 0x9c0   : > { %2099 = vadd.xlane.f32.xlu0 %v2098_v40 }
 0xa4d   : > { %v2100_v48 = vpop.xlane.xlu0 %2099 }
 0xa4e   : > { %v2101_v43 = vmul.f32 0.03125, %v2100_v48 }
 0xa50   : > { %v2102_v44 = vadd.f32 1e-12, %v2101_v43 }
 0xa52   : > { %4445 = vrsqrt.f32 %v2102_v44 }
 0xa5c   : > { %v4446_v45 = vpop.eup %4445 }
 0xa5d   : > { %v2104_v47 = vmul.f32 %v4446_v45, %v2096_v38 }
 0xa5f   : > { %v2111_v51 = vmul.f32 %v3987_v46, %v2104_v47 }
 0xa61   : > { %v2118_v53 = vadd.f32 %v3988_v49, %v2111_v51 }
 0xa63   : > { %v2119_v55 = vpack.c.bf16 %v2118_v53, %v2118_v53 }
 0xa65   : > { %4230 = vmatmul.mubr.msk.bf16.vlgmr.msra.gmra.mrb[16].mxu0 %vm829_vm4, %v2119_v55 }
 0xa66   : > { %4249 = vmatprep.mubr.msk.bf16.mxu0 %vm4573_vm0, %v4572_v2  ;;  %4246 = vmatpush3.bf16.msra.mxu0 %v4415_v29 }
 0xa67   : > { %4247 = vmatprep.subr.bf16.mxu0 %v4572_v2 }
 0xa6a   : > { %4248 = vmatpush3.bf16.msra.mxu0 %v4416_v30 }
 0xa6b   : > { %4253 = vmatprep.subr.bf16.mxu0 %v4572_v2 }
 0xb38   : > { %v2180_v0 = vpop.f32.mrb[16].mxu0 }
 0xb39   : > { %v2181_v59 = vadd.f32 %v3989_v62, %v2180_v0  ;;  %v4231_v57 = vpop.f32.mrb[17].mxu0 }
 0xb3a   : > { %v2183_v4 = vpop.f32.mrb[18].mxu0 }
 0xb3b   : > { %v2187_v5 = vmul.f32 0.044715, %v2181_v59  ;;  %v4232_v6 = vpop.f32.mrb[19].mxu0  ;;  %v2186_v13 = vmul.f32 0.5, %v2181_v59 }
 0xb3d   : > { %v2188_v7 = vmul.f32 %v2187_v5, %v2181_v59 }
 0xb3f   : > { %v2189_v8 = vmul.f32 %v2188_v7, %v2181_v59 }
 0xb41   : > { %v2190_v9 = vadd.f32 %v2189_v8, %v2181_v59 }
 0xb43   : > { %v2191_v10 = vmul.f32 0.7978846, %v2190_v9 }
 0xb45   : > { %4447 = vtanh.f32 %v2191_v10 }
 0xb4f   : > { %v4448_v12 = vpop.eup %4447 }
 0xb50   : > { %v2193_v14 = vadd.f32 1.0, %v4448_v12 }
 0xb52   : > { %v2194_v15 = vmul.f32 %v2193_v14, %v2186_v13 }
 0xb54   : > { %v2195_v50 = vpack.c.bf16 %v2194_v15, %v2194_v15 }
 0xb56   : > { %4242 = vmatmul.mubr.msk.bf16.vlgmr.msra.gmra.mrb[28].mxu1 %vm2235_vm9, %v2195_v50 }
 0xb57   : > { %4261 = vmatprep.mubr.msk.bf16.mxu1 %vm4573_vm0, %v4572_v2 }
 0xc29   : > { %v2273_v18 = vpop.f32.mrb[28].mxu1 }
 0xc2a   : > { %v2274_v52 = vadd.f32 %v3993_v17, %v2273_v18  ;;  %v4243_v19 = vpop.f32.mrb[29].mxu1 }
 0xc2b   : > { %v2276_v21 = vpop.f32.mrb[30].mxu1 }
 0xc2c   : > { %v4244_v16 = vpop.f32.mrb[31].mxu1  ;;  %v2279_v22 = vadd.f32 %v2274_v52, %v2118_v53 }
 0xc2e   : > { %v2282_v23 = vsel %vm829_vm4, %v2279_v22, 0.0 }
 0xc2f   : > { %2283 = vadd.xlane.f32.xlu0 %v2282_v23 }
 0xcbc   : > { %v2284_v24 = vpop.xlane.xlu0 %2283 }
 0xcbd   : > { %v2285_v25 = vmul.f32 0.03125, %v2284_v24 }
 0xcbf   : > { %v2286_v26 = vsub.f32 %v2279_v22, %v2285_v25 }
 0xcc1   : > { %v2287_v27 = vmul.f32 %v2286_v26, %v2286_v26 }
 0xcc3   : > { %v2288_v28 = vsel %vm829_vm4, %v2287_v27, 0.0 }
 0xcc4   : > { %2289 = vadd.xlane.f32.xlu1 %v2288_v28 }
 0xd51   : > { %v2290_v63 = vpop.xlane.xlu1 %2289 }
 0xd52   : > { %v2291_v31 = vmul.f32 0.03125, %v2290_v63 }
 0xd54   : > { %v2292_v32 = vadd.f32 1e-12, %v2291_v31 }
 0xd56   : > { %4449 = vrsqrt.f32 %v2292_v32 }
 0xd60   : > { %v4450_v33 = vpop.eup %4449 }
 0xd61   : > { %v2294_v34 = vmul.f32 %v4450_v33, %v2286_v26 }
 0xd63   : > { %v2301_v36 = vmul.f32 %v3999_v58, %v2294_v34 }
 0xd65   : > { %v5126_v37 = vadd.f32 %v4000_v35, %v2301_v36 }
 0xd67   : > { %v2309_v38 = vpack.c.bf16 %v5126_v37, %v5126_v37 }
 0xd69   : > { %4250 = vmatmul.mubr.msk.bf16.vlgmr.msra.gmra.mrb[20].mxu0 %vm829_vm4, %v2309_v38 }
 0xd6a   : > { %4255 = vmatprep.mubr.msk.bf16.mxu0 %vm4573_vm0, %v4572_v2 }
 0xe3c   : > { %v2372_v40 = vpop.f32.mrb[20].mxu0 }
 0xe3d   : > { %v2373_v41 = vadd.f32 %v4006_v39, %v2372_v40  ;;  %v4251_v42 = vpop.f32.mrb[21].mxu0 }
 0xe3e   : > { %v2375_v48 = vpop.f32.mrb[22].mxu0 }
 0xe3f   : > { %v5136_v43 = vpack.c.bf16 %v2373_v41, %v2373_v41  ;;  %v4252_v44 = vpop.f32.mrb[23].mxu0 }
 0xe41   : > { %2382 = vrot.lane.b32.xlu1 %v5136_v43, %s4577_s24  ;;  %2380 = vrot.lane.b32.xlu0 %v5136_v43, %s4576_s0  ;;  %v2392_v55 = vrot.slane %v5136_v43, %v4864_v3  ;;  %s5553_s0 = smov 64   ;;  %s5406_s24 = sand.u32 1, %s4561_s28  }
 0xe42   : > { %s3954_s25 = sshll.u32 %s5406_s24, 3  ;;  %s3824_s5 = scalar_lea.sflag [#allocation3], %s5406_s24 }
 0xe45   : > { %2384 = vrot.lane.b32.xlu1 %v5136_v43, %s4578_s3  ;;  %2547 = vrot.lane.b32.xlu0 %v5136_v43, %s5552_s2 }
 0xeb3   : > { %v5146_v45 = vpop.permute.xlu1 %2382  ;;  %v5148_v46 = vpop.permute.xlu0 %2380 }
 0xeb4   : > { %2551 = vrot.lane.b32.xlu0 %v5146_v45, %s5552_s2  ;;  %2549 = vrot.lane.b32.xlu1 %v5148_v46, %s5552_s2  ;;  %v2400_v51 = vrot.slane %v5146_v45, %v4864_v3  ;;  %v2426_v53 = vrot.slane %v5148_v46, %v4864_v3 }
 0xeb6   : > { %v2401_v60 = vcombine.low %v2392_v55, %v2400_v51  ;;  %v2402_v62 = vcombine.high %v2392_v55, %v2400_v51 }
 0xeb7   : > { %v5154_v47 = vpop.permute.xlu1 %2384  ;;  %v2548_v61 = vpop.permute.xlu0 %2547 }
 0xeb8   : > { %2553 = vrot.lane.b32.xlu1 %v5154_v47, %s5552_s2  ;;  %v2434_v49 = vrot.slane %v5154_v47, %v4864_v3  ;;  %v5173_v57 = vrot.slane %v2401_v60, %v4875_v11  ;;  %v5176_v6 = vrot.slane %v2402_v62, %v4875_v11  ;;  %v2562_v7 = vrot.slane %v2548_v61, %v4864_v3 }
 0xeba   : > { %v2435_v54 = vcombine.low %v2426_v53, %v2434_v49  ;;  %v2436_v56 = vcombine.high %v2426_v53, %v2434_v49  ;;  %v2417_v14 = vcombine.high %v5173_v57, %v4571_v1  ;;  %v2418_v50 = vcombine.high %v5176_v6, %v4571_v1 }
 0xebb   : > { %v2457_v16 = vshrl.u32 %v5173_v57, 16  ;;  %v2473_v26 = vshrl.u32 %v5176_v6, 16 }
 0xebc   : > { %v5167_v0 = vrot.slane %v2435_v54, %v4875_v11  ;;  %v5170_v59 = vrot.slane %v2436_v56, %v4875_v11  ;;  %v2465_v25 = vshrl.u32 %v2417_v14, 16  ;;  %v2481_v29 = vshrl.u32 %v2418_v50, 16 }
 0xebe   : > { %v2451_v9 = vcombine.high %v5167_v0, %v4571_v1  ;;  %v2452_v10 = vcombine.high %v5170_v59, %v4571_v1  ;;  %v2458_v17 = vshrl.u32 %v5167_v0, 16  ;;  %v2474_v19 = vshrl.u32 %v5170_v59, 16 }
 0xec0   : > { %v2466_v22 = vshrl.u32 %v2451_v9, 16  ;;  %v2482_v23 = vshrl.u32 %v2452_v10, 16  ;;  %v2459_v30 = vpack.i.b16 %v2458_v17, %v2457_v16  ;;  %v2463_v63 = vpack.i.b16 %v2451_v9, %v2417_v14 }
 0xec1   : > { %v2475_v32 = vpack.i.b16 %v2474_v19, %v2473_v26  ;;  %v2479_v33 = vpack.i.b16 %v2452_v10, %v2418_v50 }
 0xec2   : > { %v2467_v35 = vpack.i.b16 %v2466_v22, %v2465_v25  ;;  %v2483_v36 = vpack.i.b16 %v2482_v23, %v2481_v29 }
 0xf26   : > { %v2550_v4 = vpop.permute.xlu1 %2549  ;;  %v2552_v5 = vpop.permute.xlu0 %2551 }
 0xf27   : > { %v2570_v8 = vrot.slane %v2552_v5, %v4864_v3  ;;  %v2596_v21 = vrot.slane %v2550_v4, %v4864_v3 }
 0xf29   : > { %v2571_v12 = vcombine.low %v2562_v7, %v2570_v8  ;;  %v2572_v13 = vcombine.high %v2562_v7, %v2570_v8  ;;  %v2455_v7 = vpack.i.b16 %v5167_v0, %v5173_v57  ;;  %v2471_v8 = vpack.i.b16 %v5170_v59, %v5176_v6 }
 0xf2a   : > { %v2554_v15 = vpop.permute.xlu1 %2553 }
 0xf2b   : > { %v2579_v18 = vrot.slane %v2571_v12, %v4875_v11  ;;  %v2604_v52 = vrot.slane %v2554_v15, %v4864_v3  ;;  %v2586_v24 = vrot.slane %v2572_v13, %v4875_v11  ;;  %v2518_v12 = vcombine.low %v2467_v35, %v2483_v36 }
 0xf2c   : > { %v2493_v15 = vcombine.low %v2463_v63, %v2479_v33  ;;  %v2485_v19 = vcombine.low %v2455_v7, %v2471_v8 }
 0xf2d   : > { %v2605_v27 = vcombine.low %v2596_v21, %v2604_v52  ;;  %v2606_v28 = vcombine.high %v2596_v21, %v2604_v52  ;;  %v2587_v31 = vcombine.high %v2579_v18, %v4571_v1  ;;  %v2588_v38 = vcombine.high %v2586_v24, %v4571_v1 }
 0xf2e   : > { %v2627_v39 = vshrl.u32 %v2579_v18, 16  ;;  %v2643_v49 = vshrl.u32 %v2586_v24, 16  ;;  %v2525_v16 = vrot.slane %v2518_v12, %v4864_v3  ;;  %v2500_v57 = vrot.slane %v2493_v15, %v4864_v3 }
 0xf2f   : > { %v2613_v58 = vrot.slane %v2605_v27, %v4875_v11  ;;  %v2620_v34 = vrot.slane %v2606_v28, %v4875_v11  ;;  %v2635_v44 = vshrl.u32 %v2587_v31, 16  ;;  %v2651_v61 = vshrl.u32 %v2588_v38, 16 }
 0xf31   : > { %v2621_v40 = vcombine.high %v2613_v58, %v4571_v1  ;;  %v2622_v41 = vcombine.high %v2620_v34, %v4571_v1  ;;  %v2625_v42 = vpack.i.b16 %v2613_v58, %v2579_v18  ;;  %v2628_v48 = vshrl.u32 %v2613_v58, 16 }
 0xf32   : > { %v2641_v51 = vpack.i.b16 %v2620_v34, %v2586_v24  ;;  %v2644_v53 = vshrl.u32 %v2620_v34, 16  ;;  %v2510_v18 = vcombine.low %v2459_v30, %v2475_v32  ;;  %v2492_v24 = vrot.slane %v2485_v19, %v4864_v3 }
 0xf33   : > { %v2629_v55 = vpack.i.b16 %v2628_v48, %v2627_v39  ;;  %v2633_v54 = vpack.i.b16 %v2621_v40, %v2587_v31  ;;  %v2636_v56 = vshrl.u32 %v2621_v40, 16  ;;  %v2649_v60 = vpack.i.b16 %v2622_v41, %v2588_v38 }
 0xf34   : > { %v2645_v62 = vpack.i.b16 %v2644_v53, %v2643_v49  ;;  %v2652_v4 = vshrl.u32 %v2622_v41, 16  ;;  %v2655_v5 = vcombine.low %v2625_v42, %v2641_v51  ;;  %v2517_v6 = vrot.slane %v2510_v18, %v4864_v3 }
 0xf35   : > { %v2637_v9 = vpack.i.b16 %v2636_v56, %v2635_v44  ;;  %v2663_v10 = vcombine.low %v2633_v54, %v2649_v60  ;;  %v2501_v27 = vcombine.low %v2492_v24, %v2500_v57 }
 0xf36   : > { %v2653_v13 = vpack.i.b16 %v2652_v4, %v2651_v61  ;;  %v2680_v14 = vcombine.low %v2629_v55, %v2645_v62  ;;  %v2662_v50 = vrot.slane %v2655_v5, %v4864_v3  ;;  %v2526_v26 = vcombine.low %v2517_v6, %v2525_v16 }
 0xf37   : > { %v2670_v17 = vrot.slane %v2663_v10, %v4864_v3  ;;  %v2508_v35 = vrot.slane %v2501_v27, %v4875_v11 }
 0xf38   : > { %v2688_v52 = vcombine.low %v2637_v9, %v2653_v13  ;;  %v2687_v0 = vrot.slane %v2680_v14, %v4864_v3  ;;  %v2533_v33 = vrot.slane %v2526_v26, %v4875_v11 }
 0xf39   : > { %v2671_v21 = vcombine.low %v2662_v50, %v2670_v17  ;;  %v2538_v42 = vshrl.u32 %v2508_v35, 16  ;;  %v2509_v55 = vcombine.high %v2508_v35, %v4571_v1 }
 0xf3a   : > { %v2695_v59 = vrot.slane %v2688_v52, %v4864_v3  ;;  %v2539_v39 = vshrl.u32 %v2533_v33, 16  ;;  %v2537_v41 = vpack.i.b16 %v2533_v33, %v2508_v35  ;;  %v2534_v51 = vcombine.high %v2533_v33, %v4571_v1 }
 0xf3b   : > { %v2678_v22 = vrot.slane %v2671_v21, %v4875_v11  ;;  %v2544_v60 = vshrl.u32 %v2509_v55, 16 }
 0xf3c   : > { %v2696_v23 = vcombine.low %v2687_v0, %v2695_v59  ;;  %v2540_v49 = vpack.i.b16 %v2539_v39, %v2538_v42  ;;  %v2545_v54 = vshrl.u32 %v2534_v51, 16  ;;  %v2543_v56 = vpack.i.b16 %v2534_v51, %v2509_v55 }
 0xf3d   : > { %v2708_v29 = vshrl.u32 %v2678_v22, 16  ;;  %v2679_v58 = vcombine.high %v2678_v22, %v4571_v1 }
 0xf3e   : > { %v2703_v25 = vrot.slane %v2696_v23, %v4875_v11  ;;  %v2546_v61 = vpack.i.b16 %v2545_v54, %v2544_v60 }
 0xf3f   : > { %v2714_v40 = vshrl.u32 %v2679_v58, 16 }
 0xf40   : > { %v2707_v28 = vpack.i.b16 %v2703_v25, %v2678_v22  ;;  %v2709_v30 = vshrl.u32 %v2703_v25, 16  ;;  %v2704_v63 = vcombine.high %v2703_v25, %v4571_v1 }
 0xf42   : > { %v2891_v31 = vsel %vm1437_vm5, %v2707_v28, 0  ;;  %v2710_v32 = vpack.i.b16 %v2709_v30, %v2708_v29  ;;  %v2715_v36 = vshrl.u32 %v2704_v63, 16  ;;  %v2713_v38 = vpack.i.b16 %v2704_v63, %v2679_v58 }
 0xf43   : > { %4254 = vmatpush3.bf16.xpose.msra.mxu0 %v2891_v31 }
 0xf44   : > { %v2937_v34 = vsel %vm1437_vm5, %v2710_v32, 0  ;;  %4265 = vmatprep.subr.bf16.mxu0 %v4572_v2  ;;  %v2716_v48 = vpack.i.b16 %v2715_v36, %v2714_v40  ;;  %v2983_v44 = vsel %vm1437_vm5, %v2713_v38, 0 }
 0xf45   : > { %4260 = vmatpush3.bf16.xpose.msra.mxu1 %v2937_v34 }
 0xf46   : > { %4271 = vmatprep.subr.bf16.mxu1 %v4572_v2  ;;  %v3029_v53 = vsel %vm1437_vm5, %v2716_v48, 0 }
 0xf4a   : > { %4256 = vmatmul.mubr.msk.bf16.vlgmr.msra.gmra.mrb[24].mxu0 %vm1437_vm5, %v2537_v41 }
 0xf4b   : > { %4266 = vmatpush3.bf16.xpose.msra.mxu0 %v2983_v44  ;;  %4267 = vmatprep.mubr.msk.bf16.mxu0 %vm4573_vm0, %v4572_v2 }
 0xf4c   : > { %4262 = vmatmul.mubr.msk.bf16.vlgmr.msra.gmra.mrb[32].mxu1 %vm1437_vm5, %v2540_v49  ;;  %4277 = vmatprep.subr.bf16.mxu0 %v4572_v2 }
 0xf4d   : > { %4272 = vmatpush3.bf16.xpose.msra.mxu1 %v3029_v53  ;;  %4273 = vmatprep.mubr.msk.bf16.mxu1 %vm4573_vm0, %v4572_v2 }
 0xf4e   : > { %4283 = vmatprep.subr.bf16.mxu1 %v4572_v2 }
 0xf52   : > { %4268 = vmatmul.mubr.msk.bf16.vlgmr.msra.gmra.mrb[28].mxu0 %vm1437_vm5, %v2543_v56 }
 0xf53   : > { %4279 = vmatprep.mubr.msk.bf16.mxu0 %vm4573_vm0, %v4572_v2 }
 0xf54   : > { %4274 = vmatmul.mubr.msk.bf16.vlgmr.msra.gmra.mrb[36].mxu1 %vm1437_vm5, %v2546_v61 }
 0xf55   : > { %4285 = vmatprep.mubr.msk.bf16.mxu1 %vm4573_vm0, %v4572_v2 }
0x101d   : > { %v2927_v62 = vpop.f32.mrb[24].mxu0 }
0x101e   : > { %v3071_v4 = vmul.f32 0.35355338, %v2927_v62  ;;  %v4257_v5 = vpop.f32.mrb[25].mxu0 }
0x101f   : > { %v2930_v7 = vpop.f32.mrb[26].mxu0  ;;  %v2973_v8 = vpop.f32.mrb[32].mxu1 }
0x1020   : > { %v3072_v9 = vmul.f32 0.35355338, %v2973_v8  ;;  %v4258_v10 = vpop.f32.mrb[27].mxu0  ;;  %v4263_v12 = vpop.f32.mrb[33].mxu1  ;;  %v3075_v13 = vadd.f32 %v3071_v4, %v4807_v20 }
0x1021   : > { %v2976_v14 = vpop.f32.mrb[34].mxu1 }
0x1022   : > { %v4264_v15 = vpop.f32.mrb[35].mxu1  ;;  %v3079_v50 = vsel %vm1437_vm5, %v3075_v13, -inf  ;;  %v3076_v17 = vadd.f32 %v3072_v9, %v4807_v20 }
0x1023   : > { %3080 = vmax.xlane.f32.xlu0 %v3079_v50 }
0x1024   : > { %v3082_v18 = vsel %vm1437_vm5, %v3076_v17, -inf }
0x1025   : > { %3083 = vmax.xlane.f32.xlu1 %v3082_v18  ;;  %v3019_v52 = vpop.f32.mrb[28].mxu0 }
0x1026   : > { %v3073_v19 = vmul.f32 0.35355338, %v3019_v52  ;;  %v4269_v21 = vpop.f32.mrb[29].mxu0 }
0x1027   : > { %v3022_v16 = vpop.f32.mrb[30].mxu0  ;;  %v3065_v0 = vpop.f32.mrb[36].mxu1 }
0x1028   : > { %v3074_v59 = vmul.f32 0.35355338, %v3065_v0  ;;  %v4270_v57 = vpop.f32.mrb[31].mxu0  ;;  %v4275_v6 = vpop.f32.mrb[37].mxu1  ;;  %v3077_v22 = vadd.f32 %v3073_v19, %v4807_v20 }
0x1029   : > { %v3068_v23 = vpop.f32.mrb[38].mxu1 }
0x102a   : > { %v4276_v24 = vpop.f32.mrb[39].mxu1  ;;  %v3085_v25 = vsel %vm1437_vm5, %v3077_v22, -inf  ;;  %v3078_v26 = vadd.f32 %v3074_v59, %v4807_v20 }
0x102b   : > { %3086 = vmax.xlane.f32.xlu0 %v3085_v25 }
0x102c   : > { %v3088_v27 = vsel %vm1437_vm5, %v3078_v26, -inf }
0x102f   : > { %3089 = vmax.xlane.f32.xlu0 %v3088_v27 }
0x1036   : > { %2717 = vrot.lane.b32.xlu1 %v5136_v43, %s5553_s0 }
0x10b0   : > { %v3081_v28 = vpop.xlane.xlu0 %3080 }
0x10b1   : > { %v3091_v29 = vsub.f32 %v3075_v13, %v3081_v28 }
0x10b2   : > { %v3084_v30 = vpop.xlane.xlu1 %3083 }
0x10b3   : > { %v3095_v63 = vmul.f32 1.442695, %v3091_v29  ;;  %v3092_v31 = vsub.f32 %v3076_v17, %v3084_v30 }
0x10b5   : > { %4451 = vpow2.f32 %v3095_v63  ;;  %v3097_v32 = vmul.f32 1.442695, %v3092_v31 }
0x10b7   : > { %4453 = vpow2.f32 %v3097_v32 }
0x10b8   : > { %v3087_v43 = vpop.xlane.xlu0 %3086 }
0x10b9   : > { %v3093_v36 = vsub.f32 %v3077_v22, %v3087_v43 }
0x10bb   : > { %v3099_v39 = vmul.f32 1.442695, %v3093_v36 }
0x10bc   : > { %v3090_v35 = vpop.xlane.xlu0 %3089 }
0x10bd   : > { %v3094_v38 = vsub.f32 %v3078_v26, %v3090_v35  ;;  %4455 = vpow2.f32 %v3099_v39 }
0x10bf   : > { %v5252_v33 = vpop.eup %4451  ;;  %v3101_v40 = vmul.f32 1.442695, %v3094_v38 }
0x10c0   : > { %v3103_v20 = vsel %vm1437_vm5, %v5252_v33, 0.0 }
0x10c1   : > { %v5256_v58 = vpop.eup %4453  ;;  %3104 = vadd.xlane.f32.xlu1 %v3103_v20  ;;  %4457 = vpow2.f32 %v3101_v40 }
0x10c2   : > { %v3106_v34 = vsel %vm1437_vm5, %v5256_v58, 0.0 }
0x10c3   : > { %3107 = vadd.xlane.f32.xlu0 %v3106_v34 }
0x10c7   : > { %v5266_v41 = vpop.eup %4455 }
0x10cb   : > { %v5268_v42 = vpop.eup %4457 }
0x10d2   : > { %2721 = vrot.lane.b32.xlu1 %v5146_v45, %s5553_s0  ;;  %v3109_v45 = vsel %vm1437_vm5, %v5266_v41, 0.0 }
0x10d6   : > { %2723 = vrot.lane.b32.xlu1 %v5154_v47, %s5553_s0  ;;  %v3112_v47 = vsel %vm1437_vm5, %v5268_v42, 0.0 }
0x10d9   : > { %2719 = vrot.lane.b32.xlu0 %v5148_v46, %s5553_s0  ;;  %v2718_v46 = vpop.permute.xlu1 %2717  ;;  %s5421_s0 = scalar_lea.hbm %s5513_s21, %s4065_s1 }
0x10da   : > { %v2732_v51 = vrot.slane %v2718_v46, %v4864_v3 }
0x10f8   : > { %3110 = vadd.xlane.f32.xlu0 %v3109_v45 }
0x10fa   : > { %3113 = vadd.xlane.f32.xlu1 %v3112_v47 }
0x114e   : > { %v3105_v48 = vpop.xlane.xlu1 %3104 }
0x114f   : > { %4459 = vrcp.f32 %v3105_v48 }
0x1150   : > { %v3108_v44 = vpop.xlane.xlu0 %3107 }
0x1151   : > { %4461 = vrcp.f32 %v3108_v44 }
0x1152   : > { %v2722_v49 = vpop.permute.xlu1 %2721 }
0x1153   : > { %v2740_v53 = vrot.slane %v2722_v49, %v4864_v3 }
0x1154   : > { %v2720_v56 = vpop.permute.xlu0 %2719 }
0x1155   : > { %v2741_v55 = vcombine.low %v2732_v51, %v2740_v53  ;;  %v2742_v54 = vcombine.high %v2732_v51, %v2740_v53  ;;  %v2766_v4 = vrot.slane %v2720_v56, %v4864_v3 }
0x1156   : > { %v2724_v60 = vpop.permute.xlu1 %2723 }
0x1157   : > { %v2749_v61 = vrot.slane %v2741_v55, %v4875_v11  ;;  %v2774_v62 = vrot.slane %v2724_v60, %v4864_v3  ;;  %v2756_v5 = vrot.slane %v2742_v54, %v4875_v11 }
0x1159   : > { %v2775_v7 = vcombine.low %v2766_v4, %v2774_v62  ;;  %v2776_v8 = vcombine.high %v2766_v4, %v2774_v62  ;;  %v2757_v9 = vcombine.high %v2749_v61, %v4571_v1  ;;  %v2758_v13 = vcombine.high %v2756_v5, %v4571_v1  ;;  %v4460_v32 = vpop.eup %4459 }
0x115a   : > { %v2797_v14 = vshrl.u32 %v2749_v61, 16  ;;  %v2813_v19 = vshrl.u32 %v2756_v5, 16  ;;  %v3119_v45 = vmul.f32 %v4460_v32, %v5252_v33 }
0x115b   : > { %v2783_v10 = vrot.slane %v2775_v7, %v4875_v11  ;;  %v2790_v12 = vrot.slane %v2776_v8, %v4875_v11  ;;  %v2805_v52 = vshrl.u32 %v2757_v9, 16  ;;  %v2821_v22 = vshrl.u32 %v2758_v13, 16  ;;  %v4462_v34 = vpop.eup %4461 }
0x115c   : > { %v3120_v49 = vmul.f32 %v4462_v34, %v5256_v58  ;;  %v4417_v34 = vld [vmem:[%s5501_s9 + $0x10] sm:$0xff]  }
0x115d   : > { %v2791_v15 = vcombine.high %v2783_v10, %v4571_v1  ;;  %v2792_v50 = vcombine.high %v2790_v12, %v4571_v1  ;;  %v2795_v17 = vpack.i.b16 %v2783_v10, %v2749_v61  ;;  %v2798_v18 = vshrl.u32 %v2783_v10, 16 }
0x115e   : > { %v2811_v21 = vpack.i.b16 %v2790_v12, %v2756_v5  ;;  %v2814_v16 = vshrl.u32 %v2790_v12, 16  ;;  %v3123_v61 = vpack.c.bf16 %v3119_v45, %v3119_v45  ;;  %v3124_v62 = vpack.c.bf16 %v3120_v49, %v3120_v49 }
0x115f   : > { %v2799_v0 = vpack.i.b16 %v2798_v18, %v2797_v14  ;;  %v2803_v59 = vpack.i.b16 %v2791_v15, %v2757_v9  ;;  %v2806_v57 = vshrl.u32 %v2791_v15, 16  ;;  %v2819_v6 = vpack.i.b16 %v2792_v50, %v2758_v13 }
0x1160   : > { %v2815_v23 = vpack.i.b16 %v2814_v16, %v2813_v19  ;;  %v2822_v24 = vshrl.u32 %v2792_v50, 16  ;;  %v2825_v25 = vcombine.low %v2795_v17, %v2811_v21 }
0x1161   : > { %v2807_v26 = vpack.i.b16 %v2806_v57, %v2805_v52  ;;  %v2833_v27 = vcombine.low %v2803_v59, %v2819_v6 }
0x1162   : > { %v2823_v28 = vpack.i.b16 %v2822_v24, %v2821_v22  ;;  %v2850_v29 = vcombine.low %v2799_v0, %v2815_v23  ;;  %v2832_v30 = vrot.slane %v2825_v25, %v4864_v3 }
0x1163   : > { %v2840_v63 = vrot.slane %v2833_v27, %v4864_v3 }
0x1164   : > { %v2858_v31 = vcombine.low %v2807_v26, %v2823_v28  ;;  %v2857_v43 = vrot.slane %v2850_v29, %v4864_v3 }
0x1165   : > { %v2841_v20 = vcombine.low %v2832_v30, %v2840_v63 }
0x1166   : > { %v2865_v35 = vrot.slane %v2858_v31, %v4864_v3 }
0x1167   : > { %v2848_v36 = vrot.slane %v2841_v20, %v4875_v11 }
0x1168   : > { %v2866_v38 = vcombine.low %v2857_v43, %v2865_v35 }
0x1169   : > { %v2849_v39 = vcombine.high %v2848_v36, %v4571_v1  ;;  %v2878_v46 = vshrl.u32 %v2848_v36, 16 }
0x116a   : > { %v2873_v40 = vrot.slane %v2866_v38, %v4875_v11 }
0x116b   : > { %v2884_v51 = vshrl.u32 %v2849_v39, 16 }
0x116c   : > { %v2877_v47 = vpack.i.b16 %v2873_v40, %v2848_v36  ;;  %v2879_v48 = vshrl.u32 %v2873_v40, 16  ;;  %v2874_v44 = vcombine.high %v2873_v40, %v4571_v1 }
0x116e   : > { %v3131_v53 = vsel %vm1687_vm6, %v2877_v47, 0  ;;  %v2880_v55 = vpack.i.b16 %v2879_v48, %v2878_v46  ;;  %v2883_v54 = vpack.i.b16 %v2874_v44, %v2849_v39  ;;  %v2885_v56 = vshrl.u32 %v2874_v44, 16  ;;  %v4418_v46 = vld [vmem:[%s5501_s9 + $0x18] sm:$0xff]  }
0x116f   : > { %4278 = vmatpush3.bf16.msra.mxu0 %v3131_v53 }
0x1170   : > { %v3177_v60 = vsel %vm1687_vm6, %v2880_v55, 0  ;;  %4289 = vmatprep.subr.bf16.mxu0 %v4572_v2  ;;  %v2886_v33 = vpack.i.b16 %v2885_v56, %v2884_v51  ;;  %v3223_v1 = vsel %vm1687_vm6, %v2883_v54, 0 }
0x1171   : > { %4284 = vmatpush3.bf16.msra.mxu1 %v3177_v60 }
0x1172   : > { %4280 = vmatmul.mubr.msk.bf16.vlgmr.msra.gmra.mrb[32].mxu0 %vm1437_vm5, %v3123_v61  ;;  %4295 = vmatprep.subr.bf16.mxu1 %v4572_v2  ;;  %v3269_v58 = vsel %vm1687_vm6, %v2886_v33, 0 }
0x1173   : > { %4290 = vmatpush3.bf16.msra.mxu0 %v3223_v1  ;;  %4291 = vmatprep.mubr.msk.bf16.mxu0 %vm4573_vm0, %v4572_v2 }
0x1174   : > { %4286 = vmatmul.mubr.msk.bf16.vlgmr.msra.gmra.mrb[40].mxu1 %vm1437_vm5, %v3124_v62  ;;  %4301 = vmatprep.subr.bf16.mxu0 %v4572_v2 }
0x1175   : > { %4296 = vmatpush3.bf16.msra.mxu1 %v3269_v58  ;;  %4297 = vmatprep.mubr.msk.bf16.mxu1 %vm4573_vm0, %v4572_v2 }
0x1176   : > { %4309 = vmatprep.subr.bf16.mxu1 %v4572_v2 }
0x1185   : > { %v3111_v4 = vpop.xlane.xlu0 %3110 }
0x1186   : > { %4463 = vrcp.f32 %v3111_v4 }
0x1187   : > { %v3114_v5 = vpop.xlane.xlu1 %3113 }
0x1188   : > { %4465 = vrcp.f32 %v3114_v5 }
0x1190   : > { %v4464_v7 = vpop.eup %4463 }
0x1191   : > { %v3121_v8 = vmul.f32 %v4464_v7, %v5266_v41 }
0x1192   : > { %v4466_v9 = vpop.eup %4465 }
0x1193   : > { %v3122_v10 = vmul.f32 %v4466_v9, %v5268_v42  ;;  %v3125_v12 = vpack.c.bf16 %v3121_v8, %v3121_v8 }
0x1195   : > { %4292 = vmatmul.mubr.msk.bf16.vlgmr.msra.gmra.mrb[36].mxu0 %vm1437_vm5, %v3125_v12  ;;  %v3126_v13 = vpack.c.bf16 %v3122_v10, %v3122_v10 }
0x1196   : > { %4305 = vmatprep.mubr.msk.bf16.mxu0 %vm4573_vm0, %v4572_v2  ;;  %4302 = vmatpush3.bf16.msra.mxu0 %v4417_v34 }
0x1197   : > { %4298 = vmatmul.mubr.msk.bf16.vlgmr.msra.gmra.mrb[44].mxu1 %vm1437_vm5, %v3126_v13  ;;  %4303 = vmatprep.subr.bf16.mxu0 %v4572_v2  ;;  %v4025_v13 = vld [vmem:[%s5502_s10 + $0x1] ss:$0 sm:$0xff] }
0x1198   : > { %4313 = vmatprep.mubr.msk.bf16.mxu1 %vm4573_vm0, %v4572_v2 }
0x119a   : > { %4304 = vmatpush3.bf16.msra.mxu0 %v4418_v46 }
0x119b   : > { %4317 = vmatprep.subr.bf16.mxu0 %v4572_v2 }
0x1245   : > { %v3167_v14 = vpop.f32.mrb[32].mxu0 }
0x1246   : > { %v4281_v15 = vpop.f32.mrb[33].mxu0 }
0x1247   : > { %v3170_v50 = vpop.f32.mrb[34].mxu0  ;;  %v3213_v17 = vpop.f32.mrb[40].mxu1 }
0x1248   : > { %v4282_v41 = vpop.f32.mrb[35].mxu0  ;;  %v4287_v18 = vpop.f32.mrb[41].mxu1 }
0x1249   : > { %v3216_v52 = vpop.f32.mrb[42].mxu1 }
0x124a   : > { %v4288_v42 = vpop.f32.mrb[43].mxu1 }
0x1268   : > { %v3259_v19 = vpop.f32.mrb[36].mxu0 }
0x1269   : > { %v3311_v21 = vcombine.low %v3167_v14, %v3259_v19  ;;  %v3312_v16 = vcombine.high %v3167_v14, %v3259_v19  ;;  %v4293_v0 = vpop.f32.mrb[37].mxu0 }
0x126a   : > { %v3262_v59 = vpop.f32.mrb[38].mxu0  ;;  %v3305_v57 = vpop.f32.mrb[44].mxu1 }
0x126b   : > { %v3327_v6 = vcombine.low %v3213_v17, %v3305_v57  ;;  %v3328_v22 = vcombine.high %v3213_v17, %v3305_v57  ;;  %v4294_v23 = vpop.f32.mrb[39].mxu0  ;;  %v4299_v24 = vpop.f32.mrb[45].mxu1  ;;  %v3319_v26 = vrot.slane %v3311_v21, %v4864_v3  ;;  %v3326_v27 = vrot.slane %v3312_v16, %v4864_v3  ;;  %v4419_v59 = vld [vmem:[%s5505_s13 + $0x10] sm:$0xff]   ;;  %v4420_v57 = vld [vmem:[%s5505_s13 + $0x18] sm:$0xff]  }
0x126c   : > { %v3308_v25 = vpop.f32.mrb[46].mxu1  ;;  %4310 = vmatpush3.bf16.msra.mxu1 %v4419_v59  ;;  %v4031_v24 = vld [vmem:[%s5503_s11 + $0x1] ss:$0 sm:$0xff] }
0x126d   : > { %v3335_v28 = vrot.slane %v3327_v6, %v4864_v3  ;;  %v3342_v29 = vrot.slane %v3328_v22, %v4864_v3  ;;  %v4300_v30 = vpop.f32.mrb[47].mxu1  ;;  %4311 = vmatprep.subr.bf16.mxu1 %v4572_v2 }
0x126e   : > { %v4421_v30 = vld [vmem:[%s5507_s15 + $0x20] sm:$0xff]  }
0x126f   : > { %v3343_v63 = vcombine.low %v3319_v26, %v3335_v28  ;;  %v3344_v31 = vcombine.high %v3319_v26, %v3335_v28  ;;  %v3359_v32 = vcombine.low %v3326_v27, %v3342_v29  ;;  %v3360_v20 = vcombine.high %v3326_v27, %v3342_v29  ;;  %v4032_v26 = vld [vmem:[%s5504_s12 + $0x1] ss:$0 sm:$0xff] }
0x1270   : > { %4312 = vmatpush3.bf16.msra.mxu1 %v4420_v57 }
0x1271   : > { %v3351_v43 = vrot.slane %v3343_v63, %v4875_v11  ;;  %v3358_v35 = vrot.slane %v3344_v31, %v4875_v11  ;;  %v3367_v36 = vrot.slane %v3359_v32, %v4875_v11  ;;  %v3374_v38 = vrot.slane %v3360_v20, %v4875_v11  ;;  %4329 = vmatprep.subr.bf16.mxu1 %v4572_v2  ;;  %v4422_v63 = vld [vmem:[%s5507_s15 + $0x28] sm:$0xff]   ;;  %v4423_v31 = vld [vmem:[%s5507_s15 + $0x30] sm:$0xff]   ;;  %v4424_v32 = vld [vmem:[%s5507_s15 + $0x38] sm:$0xff]  }
0x1272   : > { %v4038_v20 = vld [vmem:[%s5506_s14 + $0x1] ss:$0 sm:$0xff] }
0x1273   : > { %v3379_v39 = vcombine.low %v3351_v43, %v3358_v35  ;;  %v4018_v40 = vcombine.high %v3351_v43, %v3358_v35  ;;  %v3395_v45 = vcombine.low %v3367_v36, %v3374_v38  ;;  %v4019_v47 = vcombine.high %v3367_v36, %v3374_v38 }
0x1275   : > { %v3386_v48 = vrot.slane %v3379_v39, %v4864_v3  ;;  %v3394_v44 = vrot.slane %v4018_v40, %v4864_v3  ;;  %v3402_v49 = vrot.slane %v3395_v45, %v4864_v3  ;;  %v3410_v51 = vrot.slane %v4019_v47, %v4864_v3 }
0x1277   : > { %v3412_v53 = vcombine.high %v3386_v48, %v3394_v44  ;;  %v3428_v55 = vcombine.high %v3402_v49, %v3410_v51  ;;  %v3411_v54 = vcombine.low %v3386_v48, %v3394_v44  ;;  %v3427_v56 = vcombine.low %v3402_v49, %v3410_v51 }
0x1279   : > { %v3426_v60 = vrot.slane %v3412_v53, %v4875_v11  ;;  %v3442_v61 = vrot.slane %v3428_v55, %v4875_v11  ;;  %v3419_v33 = vrot.slane %v3411_v54, %v4875_v11  ;;  %v3435_v1 = vrot.slane %v3427_v56, %v4875_v11  ;;  %v4051_v55 = vld [vmem:[%s5508_s16 + $0x1] ss:$0 sm:$0xff] }
0x127b   : > { %v3445_v62 = vcombine.low %v3426_v60, %v3442_v61  ;;  %v3444_v58 = vcombine.high %v3419_v33, %v3435_v1  ;;  %v3446_v4 = vcombine.high %v3426_v60, %v3442_v61  ;;  %v3443_v5 = vcombine.low %v3419_v33, %v3435_v1 }
0x127d   : > { %3452 = vrot.lane.b32.xlu1 %v3445_v62, %s5554_s26  ;;  %3448 = vrot.lane.b32.xlu0 %v3444_v58, %s5555_s29  ;;  %s4586_s26 = smov [#allocation2]  }
0x1281   : > { %3456 = vrot.lane.b32.xlu0 %v3446_v4, %s5556_s23  ;;  %s689_s23 = scalar_lea.vmem [#allocation2], %s3954_s25  ;;  %s4479_s25 = sshll.u32 %s4586_s26, 4  ;;  %s4480_s25 = int_to_ptr.vmem [resolvable:$false] %s4479_s25 }
0x1282   : > { %s3841_s3 = sshll.u32 %s689_s23, 4  ;;  %s4481_s29 = scalar_lea.vmem %s4480_s25, 256  ;;  %s3842_s3 = int_to_ptr.vmem [resolvable:$true] %s3841_s3 }
0x1283   : > { %s4475_s7 = scalar_lea.vmem %s3842_s3, 128  ;;  %p4482_p0 = scmp.lt.s32.totalorder %s3842_s3, %s4480_s25 }
0x1284   : > { %p4476_p11 = scmp.ne.s32.totalorder %s3842_s3, %s4475_s7  ;;  %p4483_p1 = scmp.lt.s32.totalorder %s4481_s29, %s4475_s7 }
0x1286   : > { %p4477_p12 = pnand %p4476_p11, %p4741_p5  ;;  %p4484_p2 = por %p4483_p1, %p4482_p0 }
0x1288   : > { %p4478_p13 = pneg %p4477_p12 }
0x128a   : > { %p4485_p3 = pnand %p4484_p2, %p4478_p13 }
0x12ef   : > { %v3449_v3 = vpop.permute.xlu0 %3448  ;;  %v3453_v7 = vpop.permute.xlu1 %3452 }
0x12f0   : > { %v3459_v8 = vsel %vm1437_vm5, %v3443_v5, %v3449_v3 }
0x12f1   : > { %v3460_v10 = vsel %vm2018_vm7, %v3459_v8, %v3453_v7  ;;  %v4425_v8 = vld [vmem:[%s5511_s19] sm:$0xff]  }
0x12f3   : > { %v3457_v9 = vpop.permute.xlu0 %3456 }
0x12f4   : > { %v3461_v12 = vsel %vm2020_vm8, %v3460_v10, %v3457_v9  ;;  %v4426_v9 = vld [vmem:[%s5511_s19 + $0x8] sm:$0xff]  }
0x12f5   : > { %v3462_v11 = vpack.c.bf16 %v3461_v12, %v3461_v12 }
0x12f7   : > { %4306 = vmatmul.mubr.msk.bf16.vlgmr.msra.gmra.mrb[40].mxu0 %vm829_vm4, %v3462_v11 }
0x12f8   : > { %4325 = vmatprep.mubr.msk.bf16.mxu0 %vm4573_vm0, %v4572_v2  ;;  %4318 = vmatpush3.bf16.msra.mxu0 %v4421_v30 }
0x12f9   : > { %4319 = vmatprep.subr.bf16.mxu0 %v4572_v2 }
0x12fc   : > { %4320 = vmatpush3.bf16.msra.mxu0 %v4422_v63 }
0x12fd   : > { %4321 = vmatprep.subr.bf16.mxu0 %v4572_v2 }
0x1300   : > { %4322 = vmatpush3.bf16.msra.mxu0 %v4423_v31 }
0x1301   : > { %4323 = vmatprep.subr.bf16.mxu0 %v4572_v2 }
0x1304   : > { %4324 = vmatpush3.bf16.msra.mxu0 %v4424_v32 }
0x13ca   : > { %v3525_v14 = vpop.f32.mrb[40].mxu0 }
0x13cb   : > { %v3526_v15 = vadd.f32 %v4025_v13, %v3525_v14  ;;  %v4307_v50 = vpop.f32.mrb[41].mxu0  ;;  %v4059_v14 = vld [vmem:[%s5509_s17 + $0x1] ss:$0 sm:$0xff] }
0x13cc   : > { %v3528_v17 = vpop.f32.mrb[42].mxu0 }
0x13cd   : > { %v4308_v41 = vpop.f32.mrb[43].mxu0  ;;  %v3531_v18 = vadd.f32 %v3526_v15, %v5126_v37 }
0x13cf   : > { %v3536_v52 = vsel %vm829_vm4, %v3531_v18, 0.0 }
0x13d0   : > { %3537 = vadd.xlane.f32.xlu1 %v3536_v52 }
0x145d   : > { %v3538_v42 = vpop.xlane.xlu1 %3537 }
0x145e   : > { %v3539_v19 = vmul.f32 0.03125, %v3538_v42 }
0x1460   : > { %v3540_v21 = vsub.f32 %v3531_v18, %v3539_v19 }
0x1462   : > { %v3541_v16 = vmul.f32 %v3540_v21, %v3540_v21 }
0x1464   : > { %v3542_v0 = vsel %vm829_vm4, %v3541_v16, 0.0 }
0x1465   : > { %3543 = vadd.xlane.f32.xlu0 %v3542_v0 }
0x14f2   : > { %v3544_v37 = vpop.xlane.xlu0 %3543 }
0x14f3   : > { %v3545_v6 = vmul.f32 0.03125, %v3544_v37 }
0x14f5   : > { %v3546_v22 = vadd.f32 1e-12, %v3545_v6 }
0x14f7   : > { %4467 = vrsqrt.f32 %v3546_v22 }
0x1501   : > { %v4468_v23 = vpop.eup %4467 }
0x1502   : > { %v3548_v25 = vmul.f32 %v4468_v23, %v3540_v21 }
0x1504   : > { %v3555_v27 = vmul.f32 %v4031_v24, %v3548_v25 }
0x1506   : > { %v3562_v28 = vadd.f32 %v4032_v26, %v3555_v27 }
0x1508   : > { %v3563_v29 = vpack.c.bf16 %v3562_v28, %v3562_v28 }
0x150a   : > { %4314 = vmatmul.mubr.msk.bf16.vlgmr.msra.gmra.mrb[48].mxu1 %vm829_vm4, %v3563_v29 }
0x150b   : > { %4333 = vmatprep.mubr.msk.bf16.mxu1 %vm4573_vm0, %v4572_v2  ;;  %4330 = vmatpush3.bf16.msra.mxu1 %v4425_v8 }
0x150c   : > { %4331 = vmatprep.subr.bf16.mxu1 %v4572_v2  ;;  %v4060_v2 = vld [vmem:[%s5510_s18 + $0x1] ss:$0 sm:$0xff] }
0x150f   : > { %4332 = vmatpush3.bf16.msra.mxu1 %v4426_v9 }
0x15dd   : > { %v3626_v34 = vpop.f32.mrb[48].mxu1 }
0x15de   : > { %v3627_v43 = vadd.f32 %v4038_v20, %v3626_v34  ;;  %v4315_v35 = vpop.f32.mrb[49].mxu1 }
0x15df   : > { %v3629_v36 = vpop.f32.mrb[50].mxu1 }
0x15e0   : > { %v3633_v38 = vmul.f32 0.044715, %v3627_v43  ;;  %v4316_v39 = vpop.f32.mrb[51].mxu1  ;;  %v3632_v44 = vmul.f32 0.5, %v3627_v43 }
0x15e2   : > { %v3634_v40 = vmul.f32 %v3633_v38, %v3627_v43 }
0x15e4   : > { %v3635_v45 = vmul.f32 %v3634_v40, %v3627_v43 }
0x15e6   : > { %v3636_v47 = vadd.f32 %v3635_v45, %v3627_v43 }
0x15e8   : > { %v3637_v46 = vmul.f32 0.7978846, %v3636_v47 }
0x15ea   : > { %4469 = vtanh.f32 %v3637_v46 }
0x15f4   : > { %v4470_v48 = vpop.eup %4469 }
0x15f5   : > { %v3639_v49 = vadd.f32 1.0, %v4470_v48 }
0x15f7   : > { %v3640_v51 = vmul.f32 %v3639_v49, %v3632_v44 }
0x15f9   : > { %v3641_v53 = vpack.c.bf16 %v3640_v51, %v3640_v51 }
0x15fb   : > { %4326 = vmatmul.mubr.msk.bf16.vlgmr.msra.gmra.mrb[44].mxu0 %vm2235_vm9, %v3641_v53 }
0x16ce   : > { %v3720_v54 = vpop.f32.mrb[44].mxu0 }
0x16cf   : > { %v3721_v56 = vadd.f32 %v4051_v55, %v3720_v54  ;;  %v4327_v60 = vpop.f32.mrb[45].mxu0 }
0x16d0   : > { %v3723_v61 = vpop.f32.mrb[46].mxu0 }
0x16d1   : > { %v4328_v33 = vpop.f32.mrb[47].mxu0  ;;  %v3726_v1 = vadd.f32 %v3721_v56, %v3562_v28 }
0x16d3   : > { %v3731_v62 = vsel %vm829_vm4, %v3726_v1, 0.0 }
0x16d4   : > { %3732 = vadd.xlane.f32.xlu0 %v3731_v62 }
0x1761   : > { %v3733_v58 = vpop.xlane.xlu0 %3732 }
0x1762   : > { %v3734_v4 = vmul.f32 0.03125, %v3733_v58 }
0x1764   : > { %v3735_v5 = vsub.f32 %v3726_v1, %v3734_v4 }
0x1766   : > { %v3736_v3 = vmul.f32 %v3735_v5, %v3735_v5 }
0x1768   : > { %v3737_v7 = vsel %vm829_vm4, %v3736_v3, 0.0 }
0x1769   : > { %3738 = vadd.xlane.f32.xlu1 %v3737_v7 }
0x17f6   : > { %v3739_v10 = vpop.xlane.xlu1 %3738 }
0x17f7   : > { %v3740_v12 = vmul.f32 0.03125, %v3739_v10 }
0x17f9   : > { %v3741_v11 = vadd.f32 1e-12, %v3740_v12 }
0x17fb   : > { %4471 = vrsqrt.f32 %v3741_v11 }
0x1805   : > { %v4472_v13 = vpop.eup %4471 }
0x1806   : > { %v3743_v15 = vmul.f32 %v4472_v13, %v3735_v5 }
0x1808   : > { %v3750_v50 = vmul.f32 %v4059_v14, %v3743_v15 }
0x180a   : > { %v3757_v17 = vadd.f32 %v4060_v2, %v3750_v50 }
0x180c   : > { %v3759_v41 = vpack.c.bf16 %v3757_v17, %v3757_v17  ;;  %3758 = vst.msk [vmem:[%s689_s23] sm:$0xff] %vm829_vm4, %v3757_v17 }
0x180e   : > { %4334 = vmatmul.mubr.msk.bf16.vlgmr.msra.gmra.mrb[52].mxu1 %vm829_vm4, %v3759_v41 }
0x180f   : > { %4488 = shalt.err (!%p4485_p3)
}
0x1810   : > { %s4489_s23 = scalar_lea.hbm %s5421_s0, 128  ;;  %s4493_s2 = scalar_lea.hbm %s5513_s21, 256 }
0x1811   : > { %p4490_p4 = scmp.ne.s32.totalorder %s5421_s0, %s4489_s23  ;;  %p4494_p9 = scmp.lt.u32.totalorder %s5421_s0, %s5513_s21 }
0x1812   : > { %p4495_p10 = scmp.lt.u32.totalorder %s4493_s2, %s4489_s23  ;;  %p4497_p12 = scmp.lt.u32.totalorder %s4489_s23, %s5421_s0 }
0x1813   : > { %p4491_p7 = pnand %p4490_p4, %p4741_p5 }
0x1814   : > { %p4496_p11 = por %p4495_p10, %p4494_p9 }
0x1815   : > { %p4492_p8 = pneg %p4491_p7 }
0x1816   : > { %p4498_p13 = por %p4497_p12, %p4496_p11 }
0x1818   : > { %p4499_p0 = pnand %p4498_p13, %p4492_p8 }
0x181a   : > { %4502 = shalt.err (!%p4499_p0)
}
0x181b   : > { %4337 = dma.vmem_to_hbm [thread:$0]  (%p4741_p5), %s3842_s3, 128, %s5421_s0, %s3824_s5   ;;  %v3764_v18 = vld [vmem:[%s5512_s20] sm:$0x1]  ;;  %vm3821_vm10 = vcmask 253952  }
0x181c   : > { %s4066_s23 = sshll.u32 %s4724_s4, 4  ;;  %s695_s1 = scalar_lea.vmem [#allocation4], %s5406_s24 }
0x181d   : > { %s3854_s27 = sshll.u32 %s695_s1, 4  ;;  %s5449_s0 = scalar_lea.hbm %s5514_s22, %s4066_s23  ;;  %s5451_s27 = int_to_ptr.vmem [resolvable:$true] %s3854_s27 }
0x181e   : > { %s3829_s3 = scalar_lea.sflag [#allocation5], %s5406_s24  ;;  %s4503_s5 = scalar_lea.vmem %s5451_s27, 16 }
0x181f   : > { %p4504_p1 = scmp.ne.s32.totalorder %s5451_s27, %s4503_s5  ;;  %s4587_s4 = smov [#allocation4]  }
0x1820   : > { %s4507_s25 = sshll.u32 %s4587_s4, 4  ;;  %s4508_s25 = int_to_ptr.vmem [resolvable:$false] %s4507_s25 }
0x1821   : > { %p4505_p2 = pnand %p4504_p1, %p4741_p5  ;;  %s4509_s7 = scalar_lea.vmem %s4508_s25, 32 }
0x1822   : > { %p4510_p4 = scmp.lt.s32.totalorder %s5451_s27, %s4508_s25  ;;  %p4511_p7 = scmp.lt.s32.totalorder %s4509_s7, %s4503_s5 }
0x1823   : > { %p4506_p3 = pneg %p4505_p2 }
0x1824   : > { %p4512_p8 = por %p4511_p7, %p4510_p4 }
0x1826   : > { %p4513_p9 = pnand %p4512_p8, %p4506_p3 }
0x18e1   : > { %v3814_v52 = vpop.f32.mrb[52].mxu1 }
0x18e2   : > { %v3815_v42 = vadd.f32 %v3814_v52, %v3764_v18  ;;  %v4335_v19 = vpop.f32.mrb[53].mxu1 }
0x18e3   : > { %v3817_v21 = vpop.f32.mrb[54].mxu1 }
0x18e4   : > { %4473 = vtanh.f32 %v3815_v42  ;;  %v4336_v16 = vpop.f32.mrb[55].mxu1 }
0x18ee   : > { %v4474_v0 = vpop.eup %4473 }
0x18ef   : > { %3822 = vst.msk [vmem:[%s695_s1] sm:$0x1] %vm3821_vm10, %v4474_v0 }
0x18f0   : > { %4516 = shalt.err (!%p4513_p9)
}
0x18f1   : > { %s4517_s24 = scalar_lea.hbm %s5449_s0, 16  ;;  %s4521_s1 = scalar_lea.hbm %s5514_s22, 32 }
0x18f2   : > { %p4518_p10 = scmp.ne.s32.totalorder %s5449_s0, %s4517_s24  ;;  %p4522_p13 = scmp.lt.u32.totalorder %s5449_s0, %s5514_s22 }
0x18f3   : > { %p4523_p0 = scmp.lt.u32.totalorder %s4521_s1, %s4517_s24  ;;  %p4525_p2 = scmp.lt.u32.totalorder %s4517_s24, %s5449_s0 }
0x18f4   : > { %p4519_p11 = pnand %p4518_p10, %p4741_p5 }
0x18f5   : > { %p4524_p1 = por %p4523_p0, %p4522_p13 }
0x18f6   : > { %p4520_p12 = pneg %p4519_p11 }
0x18f7   : > { %p4526_p3 = por %p4525_p2, %p4524_p1 }
0x18f9   : > { %p4527_p4 = pnand %p4526_p3, %p4520_p12 }
0x18fb   : > { %4530 = shalt.err (!%p4527_p4)
}
0x18fc   : > { %4338 = dma.vmem_to_hbm [thread:$0]  (%p4741_p5), %s5451_s27, 16, %s5449_s0, %s3829_s3  }
0x18fd PF: > { %s5557_s5 = sld [smem:[#allocation8_spill]]  ;;  %p4348_p7 = scmp.ge.s32.totalorder %s4569_s30, 2 }
0x18ff   : > { %p4342_p8 = pnand %p4348_p7, %p4745_p6 }
0x1903   : > { %s3866_s25 = sand.u32 1, %s5557_s5  }
0x1904   : > { %s3867_s7 = scalar_lea.sflag [#allocation3], %s3866_s25 }
0x1905   : > { %4548 = dma.done.wait (!%p4342_p8), %s3867_s7, 128  }
0x1906   : > { %4550 = vsyncadd (!%p4342_p8), %s3867_s7, 4294967168  ;;  %s3876_s24 = scalar_lea.sflag [#allocation5], %s3866_s25 }
0x1907   : > { %4552 = dma.done.wait (!%p4342_p8), %s3876_s24, 16  }
0x1908   : > { %4554 = vsyncadd (!%p4342_p8), %s3876_s24, 4294967280  ;;  %s5559_s30 = sld [smem:[#allocation10_spill]]  ;;  %s5560_s6 = sld [smem:[#allocation9_spill]] }
0x1909   : > { %s5561_s29 = sld [smem:[#allocation11_spill]]  ;;  %s5562_s3 = smov %s4561_s28 }
0x190e   : > { %p36_p5 = scmp.ge.s32.totalorder %s5559_s30, 4   ;;  %s5563_s28 = smov %s5560_s6 }
0x1910   :  { %38 = sbr.rel (!%p36_p5) target bundleno = 14 (0xe), region = 171 }
0x1917   :  { %3880 = vsyncpa [#allocation3], 1 }
0x1918   :  { %3882 = vsyncpa [#allocation3 + $0x1], 1 }
0x1919   :  { %3883 = vsyncpa [#allocation5], 1 }
0x191a   :  { %3885 = vsyncpa [#allocation5 + $0x1], 1 }

</bundles_post_ra>
